<compile_context>
chip_gen: v7x
topology: tpu7x:2x2x1
jax: 0.10.0
libtpu: 0.0.40
codegen_flags: <defaults>
</compile_context>

<pallas_src>
import functools

import jax
import jax.numpy as jnp
from jax import lax
from jax.experimental import pallas as pl
from jax.experimental.pallas import tpu as pltpu


def _rdbs1_kernel(x_ref, w_ref, b_ref, o_ref, patch_ref, xrow_ref, *,
                  H, W, K, G, C):
    """Fused RDBs_1 forward for one batch element.

    x_ref:     (1, G, H*W)             input, channel-major (lanes = H*W)
    w_ref:     (C, G, C*G*K*K)         packed weights; col = blk*G*K*K + tap*G + g
    b_ref:     (C, G, 1)               biases (broadcast over lanes)
    o_ref:     (1, (C+1)*G, H*W)       output = [x, tmp_1, ..., tmp_C]
    patch_ref: VMEM (C*G*K*K, H*W)     im2col matrix of cat(x, tmps)
    xrow_ref:  VMEM (G, H*W + 2*SMAX)  zero-haloed flattened channel block
    """
    HW = H * W
    P = (K - 1) // 2
    GKK = G * K * K
    SMAX = P * (W + 1)          # max |flattened spatial shift|

    # Column-validity mask per horizontal tap offset dx (kills row wrap-around).
    col = lax.broadcasted_iota(jnp.int32, (G, HW), 1) % W
    wmask = [(col >= P - dx) & (col < W + P - dx) for dx in range(K)]

    # Zero the shift buffer once per grid step (halo strips must read as 0;
    # the center is always overwritten below).  ~3 vreg stores.
    xrow_ref[...] = jnp.zeros_like(xrow_ref)

    def scatter(block, xc):
        # xc: (G, HW) f32 = channels block*G .. block*G+G-1 of cat(x, tmps).
        xrow_ref[:, SMAX:SMAX + HW] = xc
        base = block * GKK
        for dy in range(K):
            for dx in range(K):
                off = SMAX + (dy - P) * W + (dx - P)
                shifted = xrow_ref[:, off:off + HW]               # (G, HW)
                if dy == P and dx == P:
                    val = shifted                                 # center tap
                else:
                    val = jnp.where(wmask[dx], shifted, 0.0)
                t = dy * K + dx
                patch_ref[base + t * G: base + (t + 1) * G, :] = val

    # ---- channel block 0: the input itself (pass-through in the concat) ----
    x0 = x_ref[0].astype(jnp.float32)                             # (G, HW)
    o_ref[0, 0:G, :] = x0.astype(o_ref.dtype)                     # lane-dense
    scatter(0, x0)

    # ---- layers 1..C: tmp_j = relu(conv_j(cat(x, tmp_1..tmp_{j-1}))) -------
    for j in range(1, C + 1):
        rows = j * GKK
        acc = jnp.dot(w_ref[j - 1, :, :rows], patch_ref[:rows, :],
                      preferred_element_type=jnp.float32)         # (G, HW)
        tmp = jnp.maximum(acc + b_ref[j - 1], 0.0)
        o_ref[0, j * G:(j + 1) * G, :] = tmp.astype(o_ref.dtype)
        if j < C:                                                 # feed next layer
            scatter(j, tmp)


def rdbs1_forward(x_nchw, params):
    """Matches RDBs_1.forward. params[j-1] = (weight (G, G*j, K, K), bias (G,))."""
    C = len(params)
    N, G, H, W = x_nchw.shape
    K = params[0][0].shape[-1]
    P = (K - 1) // 2
    KK = K * K
    GKK = G * KK
    CGKK = C * GKK
    HW = H * W

    # Pack weights once: OIHW -> (O, block, dy, dx, g) so the contraction index
    # is block*G*K*K + (dy*K+dx)*G + g, matching the patch-row layout.  Zero-pad
    # along that axis to C*G*K*K (padded columns are never read: we slice).
    w_rows, b_rows = [], []
    for j, (w, b) in enumerate(params, start=1):
        wj = jnp.transpose(w.reshape(G, j, G, K, K), (0, 1, 3, 4, 2))
        wj = wj.reshape(G, j * GKK)
        w_rows.append(jnp.pad(wj, ((0, 0), (0, CGKK - j * GKK))))
        b_rows.append(b.reshape(G, 1))
    w_pack = jnp.stack(w_rows).astype(jnp.float32)                 # (C, G, CGKK)
    b_pack = jnp.stack(b_rows).astype(jnp.float32)                 # (C, G, 1)

    x_flat = x_nchw.reshape(N, G, HW)                              # free reshape

    kernel = functools.partial(_rdbs1_kernel, H=H, W=W, K=K, G=G, C=C)
    out = pl.pallas_call(
        kernel,
        out_shape=jax.ShapeDtypeStruct((N, (C + 1) * G, HW), x_nchw.dtype),
        grid_spec=pltpu.PrefetchScalarGridSpec(
            num_scalar_prefetch=0,
            grid=(N,),
            in_specs=[
                pl.BlockSpec((1, G, HW), lambda n: (n, 0, 0)),
                pl.BlockSpec((C, G, CGKK), lambda n: (0, 0, 0)),
                pl.BlockSpec((C, G, 1), lambda n: (0, 0, 0)),
            ],
            out_specs=pl.BlockSpec((1, (C + 1) * G, HW), lambda n: (n, 0, 0)),
            scratch_shapes=[
                pltpu.VMEM((CGKK, HW), jnp.float32),
                pltpu.VMEM((G, HW + 2 * (P * (W + 1))), jnp.float32),
            ],
        ),
        compiler_params=pltpu.CompilerParams(
            dimension_semantics=("parallel",)),
    )(x_flat, w_pack, b_pack)

    return out.reshape(N, (C + 1) * G, H, W)                       # NCHW


def init_rdbs1_params(key, C, ks, G):
    """Layer j: Conv2d(G*j -> G, ks).  Kaiming(fan_in)-style weights, small bias."""
    params = []
    for j in range(1, C + 1):
        key, kw, kb = jax.random.split(key, 3)
        fan_in = G * j * ks * ks
        w = jax.random.normal(kw, (G, G * j, ks, ks), jnp.float32) * jnp.sqrt(
            2.0 / fan_in)
        b = 0.05 * jax.random.normal(kb, (G,), jnp.float32)
        params.append((w, b))
    return params


def rdbs1_reference(x_nchw, params):
    """Pure-JAX reference (lax conv, NCHW/OIHW = PyTorch semantics)."""
    x = x_nchw
    for (w, b) in params:
        k = w.shape[-1]
        p = (k - 1) // 2
        y = lax.conv_general_dilated(
            x, w, window_strides=(1, 1), padding=[(p, p), (p, p)],
            dimension_numbers=('NCHW', 'OIHW', 'NCHW'),
            precision=lax.Precision.HIGHEST)
        y = jax.nn.relu(y + b[None, :, None, None])
        x = jnp.concatenate([x, y], axis=1)
    return x


if __name__ == "__main__":
    C, ks, G = 3, 3, 8
    N, H, W = 2, 16, 16

    key = jax.random.PRNGKey(0)
    kx, kp = jax.random.split(key)
    x = jax.random.normal(kx, (N, G, H, W), jnp.float32)
    params = init_rdbs1_params(kp, C, ks, G)

    y = rdbs1_forward(x, params)
    y = jax.block_until_ready(y)

    y_ref = rdbs1_reference(x, params)
    assert y.shape == (N, (C + 1) * G, H, W)
    max_err = float(jnp.max(jnp.abs(y - y_ref)))
    assert jnp.allclose(y, y_ref, atol=2e-3, rtol=2e-3), (
        f"mismatch vs reference (max abs err {max_err})")

    print("KERNEL_OK")
</pallas_src>

<mosaic_0001>
module attributes {stable_mosaic.version = 11 : i64} {
  func.func @_rdbs1_kernel(%arg0: i32, %arg1: memref<1x8x256xf32, #tpu.memory_space<vmem>>, %arg2: memref<3x8x216xf32, #tpu.memory_space<vmem>>, %arg3: memref<3x8x1xf32, #tpu.memory_space<vmem>>, %arg4: memref<1x32x256xf32, #tpu.memory_space<vmem>>, %arg5: memref<216x256xf32, #tpu.memory_space<vmem>>, %arg6: memref<8x290xf32, #tpu.memory_space<vmem>>) attributes {dimension_semantics = [#tpu.dimension_semantics<parallel>], iteration_bounds = array<i64: 2>, scalar_prefetch = 0 : i64, scratch_operands = 2 : i64, tpu.core_type = #tpu.core_type<tc>, window_params = [{transform_indices = @transform_0, window_bounds = array<i64: 1, 8, 256>}, {pipeline_mode = #tpu.pipeline_mode<synchronous>, transform_indices = @transform_1, window_bounds = array<i64: 3, 8, 216>}, {pipeline_mode = #tpu.pipeline_mode<synchronous>, transform_indices = @transform_2, window_bounds = array<i64: 3, 8, 1>}, {transform_indices = @transform_3, window_bounds = array<i64: 1, 32, 256>}]} {
    %0 = tpu.iota {dimensions = array<i32: 1>} : vector<8x256xi32>
    %c16_i32 = arith.constant 16 : i32
    %c0_i32 = arith.constant 0 : i32
    %1 = arith.cmpi eq, %c16_i32, %c0_i32 : i32
    %c1_i32 = arith.constant 1 : i32
    %2 = arith.select %1, %c1_i32, %c16_i32 : i32
    %3 = vector.broadcast %2 : i32 to vector<8x256xi32>
    %4 = arith.remsi %0, %3 : vector<8x256xi32>
    %c0_i32_0 = arith.constant 0 : i32
    %5 = vector.broadcast %c0_i32_0 : i32 to vector<8x256xi32>
    %6 = arith.cmpi ne, %4, %5 : vector<8x256xi32>
    %c0_i32_1 = arith.constant 0 : i32
    %7 = vector.broadcast %c0_i32_1 : i32 to vector<8x256xi32>
    %8 = arith.cmpi slt, %4, %7 : vector<8x256xi32>
    %c0_i32_2 = arith.constant 0 : i32
    %9 = arith.cmpi slt, %2, %c0_i32_2 : i32
    %10 = vector.broadcast %9 : i1 to vector<8x256xi1>
    %11 = vector.broadcast %10 : vector<8x256xi1> to vector<8x256xi1>
    %12 = arith.xori %8, %11 : vector<8x256xi1>
    %13 = arith.andi %12, %6 : vector<8x256xi1>
    %14 = vector.broadcast %2 : i32 to vector<8x256xi32>
    %15 = arith.addi %4, %14 : vector<8x256xi32>
    %16 = arith.select %13, %15, %4 : vector<8x256xi1>, vector<8x256xi32>
    %c1_i32_3 = arith.constant 1 : i32
    %17 = vector.broadcast %c1_i32_3 : i32 to vector<8x256xi32>
    %18 = arith.cmpi sge, %16, %17 : vector<8x256xi32>
    %c17_i32 = arith.constant 17 : i32
    %19 = vector.broadcast %c17_i32 : i32 to vector<8x256xi32>
    %20 = arith.cmpi slt, %16, %19 : vector<8x256xi32>
    %21 = arith.andi %18, %20 : vector<8x256xi1>
    %c0_i32_4 = arith.constant 0 : i32
    %22 = vector.broadcast %c0_i32_4 : i32 to vector<8x256xi32>
    %23 = arith.cmpi sge, %16, %22 : vector<8x256xi32>
    %c16_i32_5 = arith.constant 16 : i32
    %24 = vector.broadcast %c16_i32_5 : i32 to vector<8x256xi32>
    %25 = arith.cmpi slt, %16, %24 : vector<8x256xi32>
    %26 = arith.andi %23, %25 : vector<8x256xi1>
    %c-1_i32 = arith.constant -1 : i32
    %27 = vector.broadcast %c-1_i32 : i32 to vector<8x256xi32>
    %28 = arith.cmpi sge, %16, %27 : vector<8x256xi32>
    %c15_i32 = arith.constant 15 : i32
    %29 = vector.broadcast %c15_i32 : i32 to vector<8x256xi32>
    %30 = arith.cmpi slt, %16, %29 : vector<8x256xi32>
    %31 = arith.andi %28, %30 : vector<8x256xi1>
    %cst = arith.constant 0.000000e+00 : f32
    %32 = vector.broadcast %cst : f32 to vector<8x290xf32>
    %c0 = arith.constant 0 : index
    %c0_6 = arith.constant 0 : index
    %33 = vector.load %arg6[%c0, %c0_6] : memref<8x290xf32, #tpu.memory_space<vmem>>, vector<8x290xf32>
    tpu.vector_store %arg6[%c0, %c0_6], %32 {strides = array<i32>} : memref<8x290xf32, #tpu.memory_space<vmem>>, vector<8x290xf32>,
    %c0_7 = arith.constant 0 : index
    %c0_8 = arith.constant 0 : index
    %c0_9 = arith.constant 0 : index
    %34 = vector.load %arg1[%c0_7, %c0_8, %c0_9] : memref<1x8x256xf32, #tpu.memory_space<vmem>>, vector<1x8x256xf32>
    %35 = vector.shape_cast %34 : vector<1x8x256xf32> to vector<8x256xf32>
    %c0_10 = arith.constant 0 : index
    %c0_11 = arith.constant 0 : index
    %c0_12 = arith.constant 0 : index
    %36 = vector.load %arg4[%c0_10, %c0_11, %c0_12] : memref<1x32x256xf32, #tpu.memory_space<vmem>>, vector<1x8x256xf32>
    %37 = vector.shape_cast %36 : vector<1x8x256xf32> to vector<8x256xf32>
    %38 = vector.shape_cast %35 : vector<8x256xf32> to vector<1x8x256xf32>
    tpu.vector_store %arg4[%c0_10, %c0_11, %c0_12], %38 {strides = array<i32>} : memref<1x32x256xf32, #tpu.memory_space<vmem>>, vector<1x8x256xf32>,
    %c0_13 = arith.constant 0 : index
    %c17 = arith.constant 17 : index
    %39 = vector.load %arg6[%c0_13, %c17] : memref<8x290xf32, #tpu.memory_space<vmem>>, vector<8x256xf32>
    tpu.vector_store %arg6[%c0_13, %c17], %35 {strides = array<i32>} : memref<8x290xf32, #tpu.memory_space<vmem>>, vector<8x256xf32>,
    %c0_14 = arith.constant 0 : index
    %c0_15 = arith.constant 0 : index
    %40 = vector.load %arg6[%c0_14, %c0_15] : memref<8x290xf32, #tpu.memory_space<vmem>>, vector<8x256xf32>
    %cst_16 = arith.constant 0.000000e+00 : f32
    %41 = vector.broadcast %cst_16 : f32 to vector<8x256xf32>
    %42 = arith.select %21, %40, %41 : vector<8x256xi1>, vector<8x256xf32>
    %c0_17 = arith.constant 0 : index
    %c0_18 = arith.constant 0 : index
    %43 = vector.load %arg5[%c0_17, %c0_18] : memref<216x256xf32, #tpu.memory_space<vmem>>, vector<8x256xf32>
    tpu.vector_store %arg5[%c0_17, %c0_18], %42 {strides = array<i32>} : memref<216x256xf32, #tpu.memory_space<vmem>>, vector<8x256xf32>,
    %c0_19 = arith.constant 0 : index
    %c1 = arith.constant 1 : index
    %44 = vector.load %arg6[%c0_19, %c1] : memref<8x290xf32, #tpu.memory_space<vmem>>, vector<8x256xf32>
    %cst_20 = arith.constant 0.000000e+00 : f32
    %45 = vector.broadcast %cst_20 : f32 to vector<8x256xf32>
    %46 = arith.select %26, %44, %45 : vector<8x256xi1>, vector<8x256xf32>
    %c8 = arith.constant 8 : index
    %c0_21 = arith.constant 0 : index
    %47 = vector.load %arg5[%c8, %c0_21] : memref<216x256xf32, #tpu.memory_space<vmem>>, vector<8x256xf32>
    tpu.vector_store %arg5[%c8, %c0_21], %46 {strides = array<i32>} : memref<216x256xf32, #tpu.memory_space<vmem>>, vector<8x256xf32>,
    %c0_22 = arith.constant 0 : index
    %c2 = arith.constant 2 : index
    %48 = vector.load %arg6[%c0_22, %c2] : memref<8x290xf32, #tpu.memory_space<vmem>>, vector<8x256xf32>
    %cst_23 = arith.constant 0.000000e+00 : f32
    %49 = vector.broadcast %cst_23 : f32 to vector<8x256xf32>
    %50 = arith.select %31, %48, %49 : vector<8x256xi1>, vector<8x256xf32>
    %c16 = arith.constant 16 : index
    %c0_24 = arith.constant 0 : index
    %51 = vector.load %arg5[%c16, %c0_24] : memref<216x256xf32, #tpu.memory_space<vmem>>, vector<8x256xf32>
    tpu.vector_store %arg5[%c16, %c0_24], %50 {strides = array<i32>} : memref<216x256xf32, #tpu.memory_space<vmem>>, vector<8x256xf32>,
    %c0_25 = arith.constant 0 : index
    %c16_26 = arith.constant 16 : index
    %52 = vector.load %arg6[%c0_25, %c16_26] : memref<8x290xf32, #tpu.memory_space<vmem>>, vector<8x256xf32>
    %cst_27 = arith.constant 0.000000e+00 : f32
    %53 = vector.broadcast %cst_27 : f32 to vector<8x256xf32>
    %54 = arith.select %21, %52, %53 : vector<8x256xi1>, vector<8x256xf32>
    %c24 = arith.constant 24 : index
    %c0_28 = arith.constant 0 : index
    %55 = vector.load %arg5[%c24, %c0_28] : memref<216x256xf32, #tpu.memory_space<vmem>>, vector<8x256xf32>
    tpu.vector_store %arg5[%c24, %c0_28], %54 {strides = array<i32>} : memref<216x256xf32, #tpu.memory_space<vmem>>, vector<8x256xf32>,
    %c0_29 = arith.constant 0 : index
    %c17_30 = arith.constant 17 : index
    %56 = vector.load %arg6[%c0_29, %c17_30] : memref<8x290xf32, #tpu.memory_space<vmem>>, vector<8x256xf32>
    %c32 = arith.constant 32 : index
    %c0_31 = arith.constant 0 : index
    %57 = vector.load %arg5[%c32, %c0_31] : memref<216x256xf32, #tpu.memory_space<vmem>>, vector<8x256xf32>
    tpu.vector_store %arg5[%c32, %c0_31], %56 {strides = array<i32>} : memref<216x256xf32, #tpu.memory_space<vmem>>, vector<8x256xf32>,
    %c0_32 = arith.constant 0 : index
    %c18 = arith.constant 18 : index
    %58 = vector.load %arg6[%c0_32, %c18] : memref<8x290xf32, #tpu.memory_space<vmem>>, vector<8x256xf32>
    %cst_33 = arith.constant 0.000000e+00 : f32
    %59 = vector.broadcast %cst_33 : f32 to vector<8x256xf32>
    %60 = arith.select %31, %58, %59 : vector<8x256xi1>, vector<8x256xf32>
    %c40 = arith.constant 40 : index
    %c0_34 = arith.constant 0 : index
    %61 = vector.load %arg5[%c40, %c0_34] : memref<216x256xf32, #tpu.memory_space<vmem>>, vector<8x256xf32>
    tpu.vector_store %arg5[%c40, %c0_34], %60 {strides = array<i32>} : memref<216x256xf32, #tpu.memory_space<vmem>>, vector<8x256xf32>,
    %c0_35 = arith.constant 0 : index
    %c32_36 = arith.constant 32 : index
    %62 = vector.load %arg6[%c0_35, %c32_36] : memref<8x290xf32, #tpu.memory_space<vmem>>, vector<8x256xf32>
    %cst_37 = arith.constant 0.000000e+00 : f32
    %63 = vector.broadcast %cst_37 : f32 to vector<8x256xf32>
    %64 = arith.select %21, %62, %63 : vector<8x256xi1>, vector<8x256xf32>
    %c48 = arith.constant 48 : index
    %c0_38 = arith.constant 0 : index
    %65 = vector.load %arg5[%c48, %c0_38] : memref<216x256xf32, #tpu.memory_space<vmem>>, vector<8x256xf32>
    tpu.vector_store %arg5[%c48, %c0_38], %64 {strides = array<i32>} : memref<216x256xf32, #tpu.memory_space<vmem>>, vector<8x256xf32>,
    %c0_39 = arith.constant 0 : index
    %c33 = arith.constant 33 : index
    %66 = vector.load %arg6[%c0_39, %c33] : memref<8x290xf32, #tpu.memory_space<vmem>>, vector<8x256xf32>
    %cst_40 = arith.constant 0.000000e+00 : f32
    %67 = vector.broadcast %cst_40 : f32 to vector<8x256xf32>
    %68 = arith.select %26, %66, %67 : vector<8x256xi1>, vector<8x256xf32>
    %c56 = arith.constant 56 : index
    %c0_41 = arith.constant 0 : index
    %69 = vector.load %arg5[%c56, %c0_41] : memref<216x256xf32, #tpu.memory_space<vmem>>, vector<8x256xf32>
    tpu.vector_store %arg5[%c56, %c0_41], %68 {strides = array<i32>} : memref<216x256xf32, #tpu.memory_space<vmem>>, vector<8x256xf32>,
    %c0_42 = arith.constant 0 : index
    %c34 = arith.constant 34 : index
    %70 = vector.load %arg6[%c0_42, %c34] : memref<8x290xf32, #tpu.memory_space<vmem>>, vector<8x256xf32>
    %cst_43 = arith.constant 0.000000e+00 : f32
    %71 = vector.broadcast %cst_43 : f32 to vector<8x256xf32>
    %72 = arith.select %31, %70, %71 : vector<8x256xi1>, vector<8x256xf32>
    %c64 = arith.constant 64 : index
    %c0_44 = arith.constant 0 : index
    %73 = vector.load %arg5[%c64, %c0_44] : memref<216x256xf32, #tpu.memory_space<vmem>>, vector<8x256xf32>
    tpu.vector_store %arg5[%c64, %c0_44], %72 {strides = array<i32>} : memref<216x256xf32, #tpu.memory_space<vmem>>, vector<8x256xf32>,
    %c0_45 = arith.constant 0 : index
    %c0_46 = arith.constant 0 : index
    %c0_47 = arith.constant 0 : index
    %74 = vector.load %arg2[%c0_45, %c0_46, %c0_47] : memref<3x8x216xf32, #tpu.memory_space<vmem>>, vector<1x8x72xf32>
    %75 = vector.shape_cast %74 : vector<1x8x72xf32> to vector<8x72xf32>
    %c0_48 = arith.constant 0 : index
    %c0_49 = arith.constant 0 : index
    %76 = vector.load %arg5[%c0_48, %c0_49] : memref<216x256xf32, #tpu.memory_space<vmem>>, vector<72x256xf32>
    %cst_50 = arith.constant dense<0.000000e+00> : vector<8x256xf32>
    %77 = tpu.matmul %75, %76, %cst_50 {dimension_numbers = #tpu.dot_dimension_numbers<[1], [0], [0], [1], [0, 0, 1, 1], [], []>} : vector<8x72xf32>, vector<72x256xf32>, vector<8x256xf32> -> vector<8x256xf32>
    %c0_51 = arith.constant 0 : index
    %c0_52 = arith.constant 0 : index
    %c0_53 = arith.constant 0 : index
    %78 = vector.load %arg3[%c0_51, %c0_52, %c0_53] : memref<3x8x1xf32, #tpu.memory_space<vmem>>, vector<1x8x1xf32>
    %79 = vector.shape_cast %78 : vector<1x8x1xf32> to vector<8x1xf32>
    %80 = vector.broadcast %79 : vector<8x1xf32> to vector<8x256xf32>
    %81 = arith.addf %77, %80 : vector<8x256xf32>
    %cst_54 = arith.constant 0.000000e+00 : f32
    %82 = vector.broadcast %cst_54 : f32 to vector<8x256xf32>
    %83 = arith.maximumf %81, %82 : vector<8x256xf32>
    %c0_55 = arith.constant 0 : index
    %c8_56 = arith.constant 8 : index
    %c0_57 = arith.constant 0 : index
    %84 = vector.load %arg4[%c0_55, %c8_56, %c0_57] : memref<1x32x256xf32, #tpu.memory_space<vmem>>, vector<1x8x256xf32>
    %85 = vector.shape_cast %84 : vector<1x8x256xf32> to vector<8x256xf32>
    %86 = vector.shape_cast %83 : vector<8x256xf32> to vector<1x8x256xf32>
    tpu.vector_store %arg4[%c0_55, %c8_56, %c0_57], %86 {strides = array<i32>} : memref<1x32x256xf32, #tpu.memory_space<vmem>>, vector<1x8x256xf32>,
    %c0_58 = arith.constant 0 : index
    %c17_59 = arith.constant 17 : index
    %87 = vector.load %arg6[%c0_58, %c17_59] : memref<8x290xf32, #tpu.memory_space<vmem>>, vector<8x256xf32>
    tpu.vector_store %arg6[%c0_58, %c17_59], %83 {strides = array<i32>} : memref<8x290xf32, #tpu.memory_space<vmem>>, vector<8x256xf32>,
    %c0_60 = arith.constant 0 : index
    %c0_61 = arith.constant 0 : index
    %88 = vector.load %arg6[%c0_60, %c0_61] : memref<8x290xf32, #tpu.memory_space<vmem>>, vector<8x256xf32>
    %cst_62 = arith.constant 0.000000e+00 : f32
    %89 = vector.broadcast %cst_62 : f32 to vector<8x256xf32>
    %90 = arith.select %21, %88, %89 : vector<8x256xi1>, vector<8x256xf32>
    %c72 = arith.constant 72 : index
    %c0_63 = arith.constant 0 : index
    %91 = vector.load %arg5[%c72, %c0_63] : memref<216x256xf32, #tpu.memory_space<vmem>>, vector<8x256xf32>
    tpu.vector_store %arg5[%c72, %c0_63], %90 {strides = array<i32>} : memref<216x256xf32, #tpu.memory_space<vmem>>, vector<8x256xf32>,
    %c0_64 = arith.constant 0 : index
    %c1_65 = arith.constant 1 : index
    %92 = vector.load %arg6[%c0_64, %c1_65] : memref<8x290xf32, #tpu.memory_space<vmem>>, vector<8x256xf32>
    %cst_66 = arith.constant 0.000000e+00 : f32
    %93 = vector.broadcast %cst_66 : f32 to vector<8x256xf32>
    %94 = arith.select %26, %92, %93 : vector<8x256xi1>, vector<8x256xf32>
    %c80 = arith.constant 80 : index
    %c0_67 = arith.constant 0 : index
    %95 = vector.load %arg5[%c80, %c0_67] : memref<216x256xf32, #tpu.memory_space<vmem>>, vector<8x256xf32>
    tpu.vector_store %arg5[%c80, %c0_67], %94 {strides = array<i32>} : memref<216x256xf32, #tpu.memory_space<vmem>>, vector<8x256xf32>,
    %c0_68 = arith.constant 0 : index
    %c2_69 = arith.constant 2 : index
    %96 = vector.load %arg6[%c0_68, %c2_69] : memref<8x290xf32, #tpu.memory_space<vmem>>, vector<8x256xf32>
    %cst_70 = arith.constant 0.000000e+00 : f32
    %97 = vector.broadcast %cst_70 : f32 to vector<8x256xf32>
    %98 = arith.select %31, %96, %97 : vector<8x256xi1>, vector<8x256xf32>
    %c88 = arith.constant 88 : index
    %c0_71 = arith.constant 0 : index
    %99 = vector.load %arg5[%c88, %c0_71] : memref<216x256xf32, #tpu.memory_space<vmem>>, vector<8x256xf32>
    tpu.vector_store %arg5[%c88, %c0_71], %98 {strides = array<i32>} : memref<216x256xf32, #tpu.memory_space<vmem>>, vector<8x256xf32>,
    %c0_72 = arith.constant 0 : index
    %c16_73 = arith.constant 16 : index
    %100 = vector.load %arg6[%c0_72, %c16_73] : memref<8x290xf32, #tpu.memory_space<vmem>>, vector<8x256xf32>
    %cst_74 = arith.constant 0.000000e+00 : f32
    %101 = vector.broadcast %cst_74 : f32 to vector<8x256xf32>
    %102 = arith.select %21, %100, %101 : vector<8x256xi1>, vector<8x256xf32>
    %c96 = arith.constant 96 : index
    %c0_75 = arith.constant 0 : index
    %103 = vector.load %arg5[%c96, %c0_75] : memref<216x256xf32, #tpu.memory_space<vmem>>, vector<8x256xf32>
    tpu.vector_store %arg5[%c96, %c0_75], %102 {strides = array<i32>} : memref<216x256xf32, #tpu.memory_space<vmem>>, vector<8x256xf32>,
    %c0_76 = arith.constant 0 : index
    %c17_77 = arith.constant 17 : index
    %104 = vector.load %arg6[%c0_76, %c17_77] : memref<8x290xf32, #tpu.memory_space<vmem>>, vector<8x256xf32>
    %c104 = arith.constant 104 : index
    %c0_78 = arith.constant 0 : index
    %105 = vector.load %arg5[%c104, %c0_78] : memref<216x256xf32, #tpu.memory_space<vmem>>, vector<8x256xf32>
    tpu.vector_store %arg5[%c104, %c0_78], %104 {strides = array<i32>} : memref<216x256xf32, #tpu.memory_space<vmem>>, vector<8x256xf32>,
    %c0_79 = arith.constant 0 : index
    %c18_80 = arith.constant 18 : index
    %106 = vector.load %arg6[%c0_79, %c18_80] : memref<8x290xf32, #tpu.memory_space<vmem>>, vector<8x256xf32>
    %cst_81 = arith.constant 0.000000e+00 : f32
    %107 = vector.broadcast %cst_81 : f32 to vector<8x256xf32>
    %108 = arith.select %31, %106, %107 : vector<8x256xi1>, vector<8x256xf32>
    %c112 = arith.constant 112 : index
    %c0_82 = arith.constant 0 : index
    %109 = vector.load %arg5[%c112, %c0_82] : memref<216x256xf32, #tpu.memory_space<vmem>>, vector<8x256xf32>
    tpu.vector_store %arg5[%c112, %c0_82], %108 {strides = array<i32>} : memref<216x256xf32, #tpu.memory_space<vmem>>, vector<8x256xf32>,
    %c0_83 = arith.constant 0 : index
    %c32_84 = arith.constant 32 : index
    %110 = vector.load %arg6[%c0_83, %c32_84] : memref<8x290xf32, #tpu.memory_space<vmem>>, vector<8x256xf32>
    %cst_85 = arith.constant 0.000000e+00 : f32
    %111 = vector.broadcast %cst_85 : f32 to vector<8x256xf32>
    %112 = arith.select %21, %110, %111 : vector<8x256xi1>, vector<8x256xf32>
    %c120 = arith.constant 120 : index
    %c0_86 = arith.constant 0 : index
    %113 = vector.load %arg5[%c120, %c0_86] : memref<216x256xf32, #tpu.memory_space<vmem>>, vector<8x256xf32>
    tpu.vector_store %arg5[%c120, %c0_86], %112 {strides = array<i32>} : memref<216x256xf32, #tpu.memory_space<vmem>>, vector<8x256xf32>,
    %c0_87 = arith.constant 0 : index
    %c33_88 = arith.constant 33 : index
    %114 = vector.load %arg6[%c0_87, %c33_88] : memref<8x290xf32, #tpu.memory_space<vmem>>, vector<8x256xf32>
    %cst_89 = arith.constant 0.000000e+00 : f32
    %115 = vector.broadcast %cst_89 : f32 to vector<8x256xf32>
    %116 = arith.select %26, %114, %115 : vector<8x256xi1>, vector<8x256xf32>
    %c128 = arith.constant 128 : index
    %c0_90 = arith.constant 0 : index
    %117 = vector.load %arg5[%c128, %c0_90] : memref<216x256xf32, #tpu.memory_space<vmem>>, vector<8x256xf32>
    tpu.vector_store %arg5[%c128, %c0_90], %116 {strides = array<i32>} : memref<216x256xf32, #tpu.memory_space<vmem>>, vector<8x256xf32>,
    %c0_91 = arith.constant 0 : index
    %c34_92 = arith.constant 34 : index
    %118 = vector.load %arg6[%c0_91, %c34_92] : memref<8x290xf32, #tpu.memory_space<vmem>>, vector<8x256xf32>
    %cst_93 = arith.constant 0.000000e+00 : f32
    %119 = vector.broadcast %cst_93 : f32 to vector<8x256xf32>
    %120 = arith.select %31, %118, %119 : vector<8x256xi1>, vector<8x256xf32>
    %c136 = arith.constant 136 : index
    %c0_94 = arith.constant 0 : index
    %121 = vector.load %arg5[%c136, %c0_94] : memref<216x256xf32, #tpu.memory_space<vmem>>, vector<8x256xf32>
    tpu.vector_store %arg5[%c136, %c0_94], %120 {strides = array<i32>} : memref<216x256xf32, #tpu.memory_space<vmem>>, vector<8x256xf32>,
    %c1_95 = arith.constant 1 : index
    %c0_96 = arith.constant 0 : index
    %c0_97 = arith.constant 0 : index
    %122 = vector.load %arg2[%c1_95, %c0_96, %c0_97] : memref<3x8x216xf32, #tpu.memory_space<vmem>>, vector<1x8x144xf32>
    %123 = vector.shape_cast %122 : vector<1x8x144xf32> to vector<8x144xf32>
    %c0_98 = arith.constant 0 : index
    %c0_99 = arith.constant 0 : index
    %124 = vector.load %arg5[%c0_98, %c0_99] : memref<216x256xf32, #tpu.memory_space<vmem>>, vector<144x256xf32>
    %cst_100 = arith.constant dense<0.000000e+00> : vector<8x256xf32>
    %125 = tpu.matmul %123, %124, %cst_100 {dimension_numbers = #tpu.dot_dimension_numbers<[1], [0], [0], [1], [0, 0, 1, 1], [], []>} : vector<8x144xf32>, vector<144x256xf32>, vector<8x256xf32> -> vector<8x256xf32>
    %c1_101 = arith.constant 1 : index
    %c0_102 = arith.constant 0 : index
    %c0_103 = arith.constant 0 : index
    %126 = vector.load %arg3[%c1_101, %c0_102, %c0_103] : memref<3x8x1xf32, #tpu.memory_space<vmem>>, vector<1x8x1xf32>
    %127 = vector.shape_cast %126 : vector<1x8x1xf32> to vector<8x1xf32>
    %128 = vector.broadcast %127 : vector<8x1xf32> to vector<8x256xf32>
    %129 = arith.addf %125, %128 : vector<8x256xf32>
    %cst_104 = arith.constant 0.000000e+00 : f32
    %130 = vector.broadcast %cst_104 : f32 to vector<8x256xf32>
    %131 = arith.maximumf %129, %130 : vector<8x256xf32>
    %c0_105 = arith.constant 0 : index
    %c16_106 = arith.constant 16 : index
    %c0_107 = arith.constant 0 : index
    %132 = vector.load %arg4[%c0_105, %c16_106, %c0_107] : memref<1x32x256xf32, #tpu.memory_space<vmem>>, vector<1x8x256xf32>
    %133 = vector.shape_cast %132 : vector<1x8x256xf32> to vector<8x256xf32>
    %134 = vector.shape_cast %131 : vector<8x256xf32> to vector<1x8x256xf32>
    tpu.vector_store %arg4[%c0_105, %c16_106, %c0_107], %134 {strides = array<i32>} : memref<1x32x256xf32, #tpu.memory_space<vmem>>, vector<1x8x256xf32>,
    %c0_108 = arith.constant 0 : index
    %c17_109 = arith.constant 17 : index
    %135 = vector.load %arg6[%c0_108, %c17_109] : memref<8x290xf32, #tpu.memory_space<vmem>>, vector<8x256xf32>
    tpu.vector_store %arg6[%c0_108, %c17_109], %131 {strides = array<i32>} : memref<8x290xf32, #tpu.memory_space<vmem>>, vector<8x256xf32>,
    %c0_110 = arith.constant 0 : index
    %c0_111 = arith.constant 0 : index
    %136 = vector.load %arg6[%c0_110, %c0_111] : memref<8x290xf32, #tpu.memory_space<vmem>>, vector<8x256xf32>
    %cst_112 = arith.constant 0.000000e+00 : f32
    %137 = vector.broadcast %cst_112 : f32 to vector<8x256xf32>
    %138 = arith.select %21, %136, %137 : vector<8x256xi1>, vector<8x256xf32>
    %c144 = arith.constant 144 : index
    %c0_113 = arith.constant 0 : index
    %139 = vector.load %arg5[%c144, %c0_113] : memref<216x256xf32, #tpu.memory_space<vmem>>, vector<8x256xf32>
    tpu.vector_store %arg5[%c144, %c0_113], %138 {strides = array<i32>} : memref<216x256xf32, #tpu.memory_space<vmem>>, vector<8x256xf32>,
    %c0_114 = arith.constant 0 : index
    %c1_115 = arith.constant 1 : index
    %140 = vector.load %arg6[%c0_114, %c1_115] : memref<8x290xf32, #tpu.memory_space<vmem>>, vector<8x256xf32>
    %cst_116 = arith.constant 0.000000e+00 : f32
    %141 = vector.broadcast %cst_116 : f32 to vector<8x256xf32>
    %142 = arith.select %26, %140, %141 : vector<8x256xi1>, vector<8x256xf32>
    %c152 = arith.constant 152 : index
    %c0_117 = arith.constant 0 : index
    %143 = vector.load %arg5[%c152, %c0_117] : memref<216x256xf32, #tpu.memory_space<vmem>>, vector<8x256xf32>
    tpu.vector_store %arg5[%c152, %c0_117], %142 {strides = array<i32>} : memref<216x256xf32, #tpu.memory_space<vmem>>, vector<8x256xf32>,
    %c0_118 = arith.constant 0 : index
    %c2_119 = arith.constant 2 : index
    %144 = vector.load %arg6[%c0_118, %c2_119] : memref<8x290xf32, #tpu.memory_space<vmem>>, vector<8x256xf32>
    %cst_120 = arith.constant 0.000000e+00 : f32
    %145 = vector.broadcast %cst_120 : f32 to vector<8x256xf32>
    %146 = arith.select %31, %144, %145 : vector<8x256xi1>, vector<8x256xf32>
    %c160 = arith.constant 160 : index
    %c0_121 = arith.constant 0 : index
    %147 = vector.load %arg5[%c160, %c0_121] : memref<216x256xf32, #tpu.memory_space<vmem>>, vector<8x256xf32>
    tpu.vector_store %arg5[%c160, %c0_121], %146 {strides = array<i32>} : memref<216x256xf32, #tpu.memory_space<vmem>>, vector<8x256xf32>,
    %c0_122 = arith.constant 0 : index
    %c16_123 = arith.constant 16 : index
    %148 = vector.load %arg6[%c0_122, %c16_123] : memref<8x290xf32, #tpu.memory_space<vmem>>, vector<8x256xf32>
    %cst_124 = arith.constant 0.000000e+00 : f32
    %149 = vector.broadcast %cst_124 : f32 to vector<8x256xf32>
    %150 = arith.select %21, %148, %149 : vector<8x256xi1>, vector<8x256xf32>
    %c168 = arith.constant 168 : index
    %c0_125 = arith.constant 0 : index
    %151 = vector.load %arg5[%c168, %c0_125] : memref<216x256xf32, #tpu.memory_space<vmem>>, vector<8x256xf32>
    tpu.vector_store %arg5[%c168, %c0_125], %150 {strides = array<i32>} : memref<216x256xf32, #tpu.memory_space<vmem>>, vector<8x256xf32>,
    %c0_126 = arith.constant 0 : index
    %c17_127 = arith.constant 17 : index
    %152 = vector.load %arg6[%c0_126, %c17_127] : memref<8x290xf32, #tpu.memory_space<vmem>>, vector<8x256xf32>
    %c176 = arith.constant 176 : index
    %c0_128 = arith.constant 0 : index
    %153 = vector.load %arg5[%c176, %c0_128] : memref<216x256xf32, #tpu.memory_space<vmem>>, vector<8x256xf32>
    tpu.vector_store %arg5[%c176, %c0_128], %152 {strides = array<i32>} : memref<216x256xf32, #tpu.memory_space<vmem>>, vector<8x256xf32>,
    %c0_129 = arith.constant 0 : index
    %c18_130 = arith.constant 18 : index
    %154 = vector.load %arg6[%c0_129, %c18_130] : memref<8x290xf32, #tpu.memory_space<vmem>>, vector<8x256xf32>
    %cst_131 = arith.constant 0.000000e+00 : f32
    %155 = vector.broadcast %cst_131 : f32 to vector<8x256xf32>
    %156 = arith.select %31, %154, %155 : vector<8x256xi1>, vector<8x256xf32>
    %c184 = arith.constant 184 : index
    %c0_132 = arith.constant 0 : index
    %157 = vector.load %arg5[%c184, %c0_132] : memref<216x256xf32, #tpu.memory_space<vmem>>, vector<8x256xf32>
    tpu.vector_store %arg5[%c184, %c0_132], %156 {strides = array<i32>} : memref<216x256xf32, #tpu.memory_space<vmem>>, vector<8x256xf32>,
    %c0_133 = arith.constant 0 : index
    %c32_134 = arith.constant 32 : index
    %158 = vector.load %arg6[%c0_133, %c32_134] : memref<8x290xf32, #tpu.memory_space<vmem>>, vector<8x256xf32>
    %cst_135 = arith.constant 0.000000e+00 : f32
    %159 = vector.broadcast %cst_135 : f32 to vector<8x256xf32>
    %160 = arith.select %21, %158, %159 : vector<8x256xi1>, vector<8x256xf32>
    %c192 = arith.constant 192 : index
    %c0_136 = arith.constant 0 : index
    %161 = vector.load %arg5[%c192, %c0_136] : memref<216x256xf32, #tpu.memory_space<vmem>>, vector<8x256xf32>
    tpu.vector_store %arg5[%c192, %c0_136], %160 {strides = array<i32>} : memref<216x256xf32, #tpu.memory_space<vmem>>, vector<8x256xf32>,
    %c0_137 = arith.constant 0 : index
    %c33_138 = arith.constant 33 : index
    %162 = vector.load %arg6[%c0_137, %c33_138] : memref<8x290xf32, #tpu.memory_space<vmem>>, vector<8x256xf32>
    %cst_139 = arith.constant 0.000000e+00 : f32
    %163 = vector.broadcast %cst_139 : f32 to vector<8x256xf32>
    %164 = arith.select %26, %162, %163 : vector<8x256xi1>, vector<8x256xf32>
    %c200 = arith.constant 200 : index
    %c0_140 = arith.constant 0 : index
    %165 = vector.load %arg5[%c200, %c0_140] : memref<216x256xf32, #tpu.memory_space<vmem>>, vector<8x256xf32>
    tpu.vector_store %arg5[%c200, %c0_140], %164 {strides = array<i32>} : memref<216x256xf32, #tpu.memory_space<vmem>>, vector<8x256xf32>,
    %c0_141 = arith.constant 0 : index
    %c34_142 = arith.constant 34 : index
    %166 = vector.load %arg6[%c0_141, %c34_142] : memref<8x290xf32, #tpu.memory_space<vmem>>, vector<8x256xf32>
    %cst_143 = arith.constant 0.000000e+00 : f32
    %167 = vector.broadcast %cst_143 : f32 to vector<8x256xf32>
    %168 = arith.select %31, %166, %167 : vector<8x256xi1>, vector<8x256xf32>
    %c208 = arith.constant 208 : index
    %c0_144 = arith.constant 0 : index
    %169 = vector.load %arg5[%c208, %c0_144] : memref<216x256xf32, #tpu.memory_space<vmem>>, vector<8x256xf32>
    tpu.vector_store %arg5[%c208, %c0_144], %168 {strides = array<i32>} : memref<216x256xf32, #tpu.memory_space<vmem>>, vector<8x256xf32>,
    %c2_145 = arith.constant 2 : index
    %c0_146 = arith.constant 0 : index
    %c0_147 = arith.constant 0 : index
    %170 = vector.load %arg2[%c2_145, %c0_146, %c0_147] : memref<3x8x216xf32, #tpu.memory_space<vmem>>, vector<1x8x216xf32>
    %171 = vector.shape_cast %170 : vector<1x8x216xf32> to vector<8x216xf32>
    %c0_148 = arith.constant 0 : index
    %c0_149 = arith.constant 0 : index
    %172 = vector.load %arg5[%c0_148, %c0_149] : memref<216x256xf32, #tpu.memory_space<vmem>>, vector<216x256xf32>
    %cst_150 = arith.constant dense<0.000000e+00> : vector<8x256xf32>
    %173 = tpu.matmul %171, %172, %cst_150 {dimension_numbers = #tpu.dot_dimension_numbers<[1], [0], [0], [1], [0, 0, 1, 1], [], []>} : vector<8x216xf32>, vector<216x256xf32>, vector<8x256xf32> -> vector<8x256xf32>
    %c2_151 = arith.constant 2 : index
    %c0_152 = arith.constant 0 : index
    %c0_153 = arith.constant 0 : index
    %174 = vector.load %arg3[%c2_151, %c0_152, %c0_153] : memref<3x8x1xf32, #tpu.memory_space<vmem>>, vector<1x8x1xf32>
    %175 = vector.shape_cast %174 : vector<1x8x1xf32> to vector<8x1xf32>
    %176 = vector.broadcast %175 : vector<8x1xf32> to vector<8x256xf32>
    %177 = arith.addf %173, %176 : vector<8x256xf32>
    %cst_154 = arith.constant 0.000000e+00 : f32
    %178 = vector.broadcast %cst_154 : f32 to vector<8x256xf32>
    %179 = arith.maximumf %177, %178 : vector<8x256xf32>
    %c0_155 = arith.constant 0 : index
    %c24_156 = arith.constant 24 : index
    %c0_157 = arith.constant 0 : index
    %180 = vector.load %arg4[%c0_155, %c24_156, %c0_157] : memref<1x32x256xf32, #tpu.memory_space<vmem>>, vector<1x8x256xf32>
    %181 = vector.shape_cast %180 : vector<1x8x256xf32> to vector<8x256xf32>
    %182 = vector.shape_cast %179 : vector<8x256xf32> to vector<1x8x256xf32>
    tpu.vector_store %arg4[%c0_155, %c24_156, %c0_157], %182 {strides = array<i32>} : memref<1x32x256xf32, #tpu.memory_space<vmem>>, vector<1x8x256xf32>,
    return
  }
  func.func @transform_0(%arg0: i32) -> (i32, i32, i32) {
    %c0_i32 = arith.constant 0 : i32
    %c0_i32_0 = arith.constant 0 : i32
    %c0_i32_1 = arith.constant 0 : i32
    return %arg0, %c0_i32, %c0_i32_0 : i32, i32, i32
  }
  func.func @transform_1(%arg0: i32) -> (i32, i32, i32) {
    %c0_i32 = arith.constant 0 : i32
    %c0_i32_0 = arith.constant 0 : i32
    %c0_i32_1 = arith.constant 0 : i32
    %c0_i32_2 = arith.constant 0 : i32
    return %c0_i32, %c0_i32_0, %c0_i32_1 : i32, i32, i32
  }
  func.func @transform_2(%arg0: i32) -> (i32, i32, i32) {
    %c0_i32 = arith.constant 0 : i32
    %c0_i32_0 = arith.constant 0 : i32
    %c0_i32_1 = arith.constant 0 : i32
    %c0_i32_2 = arith.constant 0 : i32
    return %c0_i32, %c0_i32_0, %c0_i32_1 : i32, i32, i32
  }
  func.func @transform_3(%arg0: i32) -> (i32, i32, i32) {
    %c0_i32 = arith.constant 0 : i32
    %c0_i32_0 = arith.constant 0 : i32
    %c0_i32_1 = arith.constant 0 : i32
    return %arg0, %c0_i32, %c0_i32_0 : i32, i32, i32
  }
}

</mosaic_0001>

<bundles_post_ra>
// kernel: tpu_custom_call.1
= control target key start
LH: loop header
LB: loop body
LE: loop exit
PB: predicated region body
PF: predicated region fallthrough
CT: control target
= control target key end

     0   :  { %8 = vsyncpa [#allocation5], 0  ;;  %s2398_s0 = inlined_call_operand.hbm [shape: f32[2,8,256], index: 0, kind: input, shape index: {}]   ;;  %s2399_s1 = inlined_call_operand.hbm [shape: f32[3,8,216], index: 1, kind: input, shape index: {}]   ;;  %s2400_s2 = inlined_call_operand.vmem [shape: f32[3,8,1], index: 2, kind: input, shape index: {}]   ;;  %s2401_s3 = inlined_call_operand.hbm [shape: f32[2,32,256], index: 3, kind: output, shape index: {}]  }
   0x1   :  { %10 = vsyncpa [#allocation5 + $0x1], 0 }
   0x2   :  { %11 = vsyncpa [#allocation8], 0 }
   0x3   :  { %12 = vsyncpa [#allocation6], 0 }
   0x4   :  { %14 = vsyncpa [#allocation6 + $0x1], 0  ;;  %s1870_s12 = smov 0   ;;  %s1872_s13 = smov 0  }
   0x5   :  { %s1874_s14 = smov 0   ;;  %s1876_s15 = smov 0  }
   0x6 LB: > { %s1891_s16 = sadd.s32 4294967295, %s1829_s15   ;;  %s1265_s17 = sadd.s32 4294967294, %s1829_s15   ;;  %s1829_s15 = sphi %s1876_s15, %s2462_s15   ;;  %s1825_s14 = sphi %s1874_s14, %s2461_s14   ;;  %s1821_s13 = sphi %s1872_s13, %s2460_s13   ;;  %s1817_s12 = sphi %s1870_s12, %s2459_s12  }
   0x7   : > { %p40_p0 = scmp.ne.s32.totalorder %s1821_s13, %s1817_s12  ;;  %p2402_p1 = scmp.eq.s32.totalorder %s1891_s16, 0 }
   0x8   : > { %p112_p3 = scmp.eq.s32.totalorder %s1265_s17, 1  ;;  %p1266_p5 = scmp.ge.s32.totalorder %s1829_s15, 1 }
   0x9   : > { %p1900_p4 = por %p2402_p1, %p40_p0  ;;  %p119_p7 = scmp.lt.s32.totalorder %s1829_s15, 3 }
   0xa   : > { %p1905_p6 = por %p112_p3, %p40_p0  ;;  %s1831_s21 = smov [#allocation7]  }
   0xb   : > { %s2410_s18 = scalar_select %p1900_p4, 1, 0 }
   0xc   : > { %s2411_s19 = scalar_select %p1905_p6, 1, 0 }
   0xd   : > { %p1910_p8 = pnand %p1266_p5, %p119_p7  ;;  %s131_s22 = sshll.u32 %s1831_s21, 4  ;;  %s1914_s22 = int_to_ptr.vmem [resolvable:$true] %s131_s22 }
   0xe   : > { %s1926_s24 = sadd.s32 1, %s1829_s15   ;;  %s27_s25 = sadd.s32 1, %s1825_s14 }
   0xf   : > { %s2412_s20 = scalar_select %p1910_p8, 1, 0 }
  0x10   : > { %p1524_p9 = pneg %p1910_p8  ;;  %s24_s26 = ssub.s32 %s1829_s15, %s1926_s24 }
  0x11   : > { %s1701_s29 = scalar_lea.hbm %s2399_s1, 768 }
  0x12   : > { %p1921_p11 = pnand %p1524_p9, %p2402_p1  ;;  %p1702_p12 = scmp.ne.s32.totalorder %s2399_s1, %s1701_s29 }
  0x13   : > { %p1708_p5 = scmp.lt.u32.totalorder %s1701_s29, %s2399_s1 }
  0x14   : > { %p1703_p13 = pneg %p1921_p11 }
  0x16   : > { %p1704_p0 = pnand %p1703_p13, %p1702_p12 }
  0x18   : > { %p1705_p3 = pneg %p1704_p0 }
  0x1a   : > { %p1710_p7 = pnand %p1708_p5, %p1705_p3 }
  0x1c   : > { %1713 = shalt.err (!%p1710_p7)
}
  0x1d   : > { %s1714_s7 = scalar_lea.vmem %s1914_s22, 768  ;;  %p1722_p2 = scmp.lt.s32.totalorder %s1914_s22, %s1914_s22 }
  0x1e   : > { %p1715_p9 = scmp.ne.s32.totalorder %s1914_s22, %s1714_s7  ;;  %p1723_p6 = scmp.lt.s32.totalorder %s1714_s7, %s1714_s7 }
  0x20   : > { %p1717_p10 = pnand %p1715_p9, %p1703_p13  ;;  %p1724_p4 = por %p1723_p6, %p1722_p2 }
  0x22   : > { %p1718_p1 = pneg %p1717_p10 }
  0x24   : > { %p1725_p8 = pnand %p1724_p4, %p1718_p1 }
  0x26   : > { %1728 = shalt.err (!%p1725_p8)
}
  0x27   : > { %s1832_s8 = smov 256   ;;  %s1833_s9 = smov 16  }
  0x28   : > { %1527 = dma.hbm_to_vmem [thread:$0]  (!%p1921_p11), %s2399_s1, 768, %s1914_s22, [#allocation8], %s1832_s8, %s1832_s8, %s1833_s9  }
  0x29   : > { %p25_p2 = scmp.eq.s32.totalorder %s24_s26, 0  ;;  %p34_p1 = scmp.ne.s32.totalorder %s1825_s14, %s1821_s13 }
  0x2a   : > { %p35_p4 = scmp.eq.s32.totalorder %s1829_s15, 0  ;;  %p1537_p6 = scmp.lt.s32.totalorder %s1829_s15, 2 }
  0x2b   : > { %s1957_s17 = scalar_select %p25_p2, %s1825_s14, %s27_s25  }
  0x2c   : > { %p36_p8 = por %p35_p4, %p34_p1  ;;  %p2414_p10 = scmp.eq.s32.totalorder %s1891_s16, 1 }
  0x2d   : > { %s148_s27 = sand.u32 1, %s1825_s14   ;;  %s1286_s28 = sshll.u32 %s1829_s15, 8 }
  0x2e   : > { %p1961_p12 = por %p2414_p10, %p34_p1  ;;  %s1269_s29 = sshll.u32 %s148_s27, 4 }
  0x2f   : > { %s1970_s4 = scalar_lea.hbm %s2398_s0, %s1286_s28  ;;  %s152_s22 = scalar_lea.vmem [#allocation4], %s1269_s29 }
  0x30   : > { %s160_s25 = sshll.u32 %s152_s22, 4  ;;  %p1972_p11 = pnand %p1537_p6, %p36_p8  ;;  %s1976_s25 = int_to_ptr.vmem [resolvable:$true] %s160_s25 }
  0x31   : > { %s149_s5 = scalar_lea.sflag [#allocation5], %s148_s27  ;;  %s1729_s6 = scalar_lea.hbm %s1970_s4, 256 }
  0x32   : > { %p1730_p13 = scmp.ne.s32.totalorder %s1970_s4, %s1729_s6  ;;  %p1731_p0 = pneg %p1972_p11 }
  0x33   : > { %s1734_s9 = scalar_lea.hbm %s2398_s0, 512  ;;  %p1735_p7 = scmp.lt.u32.totalorder %s1970_s4, %s2398_s0 }
  0x34   : > { %p1732_p3 = pnand %p1731_p0, %p1730_p13  ;;  %p1736_p9 = scmp.lt.u32.totalorder %s1734_s9, %s1729_s6 }
  0x35   : > { %p1738_p1 = scmp.lt.u32.totalorder %s1729_s6, %s1970_s4 }
  0x36   : > { %p1733_p5 = pneg %p1732_p3  ;;  %p1737_p2 = por %p1736_p9, %p1735_p7 }
  0x38   : > { %p1739_p4 = por %p1738_p1, %p1737_p2 }
  0x3a   : > { %p1740_p6 = pnand %p1739_p4, %p1733_p5 }
  0x3c   : > { %1743 = shalt.err (!%p1740_p6)
}
  0x3d   : > { %s1744_s27 = scalar_lea.vmem %s1976_s25, 256  ;;  %s1834_s28 = smov [#allocation4]  }
  0x3e   : > { %p1745_p8 = scmp.ne.s32.totalorder %s1976_s25, %s1744_s27  ;;  %s1749_s29 = sshll.u32 %s1834_s28, 4  ;;  %s1750_s29 = int_to_ptr.vmem [resolvable:$false] %s1749_s29 }
  0x3f   : > { %s1751_s23 = scalar_lea.vmem %s1750_s29, 512  ;;  %p1752_p3 = scmp.lt.s32.totalorder %s1976_s25, %s1750_s29 }
  0x40   : > { %p1747_p10 = pnand %p1745_p8, %p1731_p0  ;;  %p1753_p7 = scmp.lt.s32.totalorder %s1751_s23, %s1744_s27 }
  0x42   : > { %p1748_p13 = pneg %p1747_p10  ;;  %p1754_p9 = por %p1753_p7, %p1752_p3 }
  0x44   : > { %p1755_p2 = pnand %p1754_p9, %p1748_p13 }
  0x46   : > { %1758 = shalt.err (!%p1755_p2)
}
  0x47   : > { %1531 = dma.hbm_to_vmem [thread:$0]  (!%p1972_p11), %s1970_s4, 256, %s1976_s25, %s149_s5  }
  0x48   : > { %p2417_p5 = scmp.ne.s32.totalorder %s2412_s20, 0 }
  0x49   : > { %s2006_s30 = sand.u32 (!%p2417_p5), 1, %s1821_s13   ;;  %p2418_p0 = scmp.ne.s32.totalorder (!%p2417_p5), %s2410_s18, 0 }
  0x4a   : > { %169 = sbr.rel (%p2417_p5) target bundleno = 1569 (0x621), region = 32  ;;  %s1273_s22 = sshll.u32 (!%p2417_p5), %s2006_s30, 4 }
  0x4b   : > { %s172_s6 = scalar_lea.sflag (!%p2417_p5), [#allocation5], %s2006_s30  ;;  %s175_s7 = scalar_lea.vmem (!%p2417_p5), [#allocation4], %s1273_s22 }
  0x51   : > { %1804 = dma.done.wait (%p2418_p0), %s172_s6, 256  }
  0x52   : > { %1806 = vsyncadd (%p2418_p0), %s172_s6, 4294967040  ;;  %p2419_p1 = scmp.eq.s32.totalorder %s1891_s16, 0 }
  0x54   : > { %1808 = dma.done.wait (%p2419_p1), [#allocation8], 768   ;;  %p2420_p11 = pmov %p2419_p1 }
  0x55   : > { %v1835_v0 = vmov 0.0   ;;  %vm249_vm0 = vcmask 277504   ;;  %s1275_s20 = sshll.u32 %s2006_s30, 6  ;;  %v251_v1 = vld [vmem:[%s175_s7] sm:$0xff]  ;;  %v252_v2 = vld [vmem:[%s175_s7 + $0x8] sm:$0xff]  ;;  %s1836_s4 = smov 17   ;;  %v202_v11 = vlaneseq }
  0x56   : > { %1810 = vsyncadd (%p2420_p11), [#allocation8], 4294966528  ;;  %247 = vst [vmem:[#allocation3] sm:$0xff] %v1835_v0  ;;  %535 = vmatprep.mubr.f32.mxu1 %v1835_v0  ;;  %257 = vrot.lane.b32.xlu0 %v251_v1, %s1836_s4  ;;  %s2020_s18 = scalar_lea.vmem [#allocation9], %s1275_s20  ;;  %vm266_vm1 = vcmask 1047688   ;;  %vm261_vm2 = vcmask 138240  }
  0x57   : > { %250 = vst.msk [vmem:[#allocation3 + $0x10] sm:$0xff] %vm249_vm0, %v1835_v0  ;;  %253 = vst [vmem:[%s2020_s18] sm:$0xff] %v251_v1  ;;  %s1837_s25 = smov 126   ;;  %s1838_s26 = smov 127   ;;  %v461_v9 = vld [vmem:[%s2400_s2] sm:$0xff]  ;;  %v1845_v10 = vmov 0   ;;  %v203_v14 = vand.u32 127, %v202_v11 }
  0x58   : > { %254 = vst [vmem:[%s2020_s18 + $0x8] sm:$0xff] %v252_v2  ;;  %s1839_s5 = smov 111   ;;  %s1840_s8 = smov 112   ;;  %1624 = vset.pattern.permute.xlu1 %v1845_v10  ;;  %1665 = vset.pattern.permute.xlu0 %v1845_v10  ;;  %vm288_vm4 = vcmask 1039360   ;;  %vm2408_vm6 = vcmask 1031168   ;;  %vm1846_vm7 = vmmov 1  }
  0x59   : > { %s1841_s9 = smov 96   ;;  %s1842_s10 = smov 110   ;;  %v204_v17 = vadd.s32 128, %v203_v14  ;;  %v209_v21 = vand.u32 15, %v203_v14  ;;  %vm2405_vm9 = vcmask 916480   ;;  %vm351_vm13 = vcmask 908288  }
  0x5a   : > { %259 = vrot.lane.b32.xlu0 %v252_v2, %s1836_s4  ;;  %s1843_s11 = smov 94   ;;  %s1844_s27 = smov 95   ;;  %vm2406_vm15 = vcmask 900096  }
  0x5b   : > { %v216_v20 = vand.u32 15, %v204_v17  ;;  %vm2064_vm5 = vcmp.ge.s32.totalorder %v209_v21, 1  ;;  %vm2093_vm12 = vcmp.lt.s32.totalorder %v209_v21, 15  ;;  %s1182_s20 = sshll.u32 %s2020_s18, 4  ;;  %s2347_s20 = int_to_ptr.vmem [resolvable:$true] %s1182_s20 }
  0x5c   : > { %vm2085_vm10 = vmpackc.low %vm1846_vm7, %vm2064_vm5 }
  0x5d   : > { %vm2060_vm3 = vcmp.ge.s32.totalorder %v216_v20, 1  ;;  %vm2089_vm11 = vcmp.lt.s32.totalorder %v216_v20, 15  ;;  %vm2125_vm0 = vmpackc.low %vm2064_vm5, %vm2093_vm12  ;;  %vm391_vm5 = vcmask 785408  }
  0x5e   : > { %vm2072_vm8 = vmpackc.low %vm1846_vm7, %vm2060_vm3 }
  0x5f   : > { %vm2114_vm14 = vmpackc.low %vm2060_vm3, %vm2089_vm11 }
  0x60   : > { %vm2142_vm3 = vmpackc.low %vm2089_vm11, %vm1846_vm7 }
  0xc8   : > { %v258_v3 = vpop.permute.xlu0 %257 }
  0xc9   : > { %267 = vst.msk [vmem:[#allocation3] sm:$0xff] %vm266_vm1, %v258_v3 }
  0xcc   : > { %v260_v4 = vpop.permute.xlu0 %259 }
  0xcd   : > { %269 = vst.msk [vmem:[#allocation3 + $0x10] sm:$0xff] %vm261_vm2, %v260_v4  ;;  %v262_v7 = vsel %vm261_vm2, %v258_v3, %v260_v4 }
  0xd0   : > { %v2027_v5 = vld [vmem:[#allocation3] sm:$0xff] }
  0xd1   : > { %303 = vrot.lane.b32.xlu0 %v2027_v5, %s1837_s25  ;;  %282 = vrot.lane.b32.xlu1 %v2027_v5, %s1838_s26 }
  0xd4   : > { %v299_v6 = vld [vmem:[#allocation3 + $0x10] sm:$0xff] }
  0xd5   : > { %345 = vrot.lane.b32.xlu0 %v2027_v5, %s1839_s5  ;;  %324 = vrot.lane.b32.xlu1 %v2027_v5, %s1840_s8  ;;  %v1594_v8 = vpack.i.bf16 %v299_v6, %v262_v7 }
  0xd9   : > { %385 = vrot.lane.b32.xlu0 %v2027_v5, %s1841_s9  ;;  %364 = vrot.lane.b32.xlu1 %v2027_v5, %s1842_s10 }
  0xdd   : > { %1595 = vrot.lane.b32.xlu0 %v1594_v8, %s1837_s25  ;;  %1590 = vrot.lane.b32.xlu1 %v1594_v8, %s1838_s26 }
  0xe1   : > { %1605 = vrot.lane.b32.xlu0 %v1594_v8, %s1839_s5  ;;  %1600 = vrot.lane.b32.xlu1 %v1594_v8, %s1840_s8 }
  0xe5   : > { %1615 = vrot.lane.b32.xlu0 %v1594_v8, %s1841_s9  ;;  %1610 = vrot.lane.b32.xlu1 %v1594_v8, %s1842_s10 }
  0xe9   : > { %429 = vrot.lane.b32.xlu0 %v262_v7, %s1843_s11  ;;  %1620 = vrot.lane.b32.xlu1 %v1594_v8, %s1844_s27 }
  0xed   : > { %427 = vrot.lane.b32.xlu0 %v2027_v5, %s1843_s11  ;;  %406 = vrot.lane.b32.xlu1 %v2027_v5, %s1844_s27 }
  0xf1   : > { %431 = vrot.lane.b32.xlu1 %v299_v6, %s1843_s11 }
  0xf5   : > { %464 = vperm.xlu1 %1624, %v461_v9  }
 0x143   : > { %v304_v12 = vpop.permute.xlu0 %303  ;;  %v283_v13 = vpop.permute.xlu1 %282 }
 0x147   : > { %v346_v15 = vpop.permute.xlu0 %345  ;;  %v325_v16 = vpop.permute.xlu1 %324 }
 0x14b   : > { %v2058_v18 = vpop.permute.xlu0 %385  ;;  %v365_v19 = vpop.permute.xlu1 %364 }
 0x14f   : > { %v1596_v22 = vpop.permute.xlu0 %1595  ;;  %v1591_v23 = vpop.permute.xlu1 %1590 }
 0x150   : > { %v1593_v25 = vunpack.i.h.bf16 %v1591_v23  ;;  %v1592_v26 = vunpack.i.l.bf16 %v1591_v23  ;;  %v1598_v28 = vunpack.i.h.bf16 %v1596_v22  ;;  %v1597_v29 = vunpack.i.l.bf16 %v1596_v22 }
 0x152   : > { %v290_v30 = vsel %vm288_vm4, %v1592_v26, %v1593_v25  ;;  %v289_v32 = vsel %vm288_vm4, %v283_v13, %v1592_v26  ;;  %v310_v44 = vsel %vm2408_vm6, %v304_v12, %v1597_v29  ;;  %v311_v45 = vsel %vm2408_vm6, %v1597_v29, %v1598_v28 }
 0x153   : > { %v1606_v33 = vpop.permute.xlu0 %1605  ;;  %v1601_v34 = vpop.permute.xlu1 %1600  ;;  %v2077_v35 = vpack.c.bf16 %v290_v30, %v262_v7  ;;  %v2080_v36 = vpack.c.bf16 %v289_v32, %v2027_v5 }
 0x154   : > { %v1603_v39 = vunpack.i.h.bf16 %v1601_v34  ;;  %v1602_v40 = vunpack.i.l.bf16 %v1601_v34  ;;  %v1608_v42 = vunpack.i.h.bf16 %v1606_v33  ;;  %v1607_v43 = vunpack.i.l.bf16 %v1606_v33  ;;  %v725_v34 = vld [vmem:[#allocation7 + $0x18] sm:$0xff] }
 0x155   : > { %1362 = vmatprep.subr.msk.bf16.mxu1 %vm2072_vm8, %v2077_v35  ;;  %1440 = vmatprep.subr.msk.bf16.mxu0 %vm2072_vm8, %v2077_v35 }
 0x156   : > { %v331_v46 = vsel %vm2405_vm9, %v325_v16, %v1602_v40  ;;  %v332_v47 = vsel %vm2405_vm9, %v1602_v40, %v1603_v39  ;;  %1365 = vmatpush1.bf16.msk.msra.mxu1 %vm2085_vm10, %v2080_v36  ;;  %1443 = vmatpush1.bf16.msk.msra.mxu0 %vm2085_vm10, %v2080_v36  ;;  %v352_v56 = vsel %vm351_vm13, %v346_v15, %v1607_v43  ;;  %vm2407_vm9 = vcmask 777216   ;;  %v442_v16 = vld [vmem:[#allocation7] sm:$0xff] }
 0x157   : > { %v1366_v49 = vpack.c.bf16 %v332_v47, %v311_v45  ;;  %v1369_v50 = vpack.c.bf16 %v331_v46, %v310_v44  ;;  %v1616_v51 = vpop.permute.xlu0 %1615  ;;  %v1611_v52 = vpop.permute.xlu1 %1610  ;;  %v353_v57 = vsel %vm351_vm13, %v1607_v43, %v1608_v42 }
 0x158   : > { %v1613_v54 = vunpack.i.h.bf16 %v1611_v52  ;;  %v1612_v55 = vunpack.i.l.bf16 %v1611_v52  ;;  %v1618_v58 = vunpack.i.h.bf16 %v1616_v51  ;;  %v1617_v59 = vunpack.i.l.bf16 %v1616_v51 }
 0x159   : > { %1368 = vmatprep.subr.msk.bf16.mxu1 %vm2114_vm14, %v1366_v49  ;;  %1446 = vmatprep.subr.msk.bf16.mxu0 %vm2114_vm14, %v1366_v49 }
 0x15a   : > { %v371_v60 = vsel %vm2406_vm15, %v365_v19, %v1612_v55  ;;  %v372_v61 = vsel %vm2406_vm15, %v1612_v55, %v1613_v54  ;;  %1371 = vmatpush1.bf16.msk.msra.mxu1 %vm2125_vm0, %v1369_v50  ;;  %1449 = vmatpush1.bf16.msk.msra.mxu0 %vm2125_vm0, %v1369_v50  ;;  %vm2151_vm15 = vmpackc.low %vm2093_vm12, %vm1846_vm7  ;;  %v393_v6 = vsel %vm391_vm5, %v1617_v59, %v1618_v58  ;;  %vm2409_vm7 = vcmask 769024  }
 0x15b   : > { %v1372_v63 = vpack.c.bf16 %v372_v61, %v353_v57  ;;  %v1375_v0 = vpack.c.bf16 %v371_v60, %v352_v56  ;;  %v1621_v1 = vpop.permute.xlu1 %1620  ;;  %v430_v5 = vpop.permute.xlu0 %429  ;;  %v392_v10 = vsel %vm391_vm5, %v2058_v18, %v1617_v59 }
 0x15c   : > { %v1623_v3 = vunpack.i.h.bf16 %v1621_v1  ;;  %v1622_v4 = vunpack.i.l.bf16 %v1621_v1 }
 0x15d   : > { %1374 = vmatprep.subr.msk.bf16.mxu1 %vm2142_vm3, %v1372_v63  ;;  %1452 = vmatprep.subr.msk.bf16.mxu0 %vm2142_vm3, %v1372_v63 }
 0x15e   : > { %v414_v7 = vsel %vm2407_vm9, %v1622_v4, %v1623_v3  ;;  %1377 = vmatpush1.bf16.msk.msra.mxu1 %vm2151_vm15, %v1375_v0  ;;  %1455 = vmatpush1.bf16.msk.msra.mxu0 %vm2151_vm15, %v1375_v0 }
 0x15f   : > { %v1378_v8 = vpack.c.bf16 %v414_v7, %v393_v6  ;;  %v407_v9 = vpop.permute.xlu1 %406  ;;  %v428_v13 = vpop.permute.xlu0 %427 }
 0x160   : > { %v413_v11 = vsel %vm2407_vm9, %v407_v9, %v1622_v4  ;;  %vm467_vm9 = vcmask 588800   ;;  %v434_v17 = vsel %vm2409_vm7, %v428_v13, %v430_v5 }
 0x161   : > { %v1381_v12 = vpack.c.bf16 %v413_v11, %v392_v10  ;;  %1380 = vmatprep.subr.msk.bf16.mxu1 %vm2072_vm8, %v1378_v8  ;;  %1458 = vmatprep.subr.msk.bf16.mxu0 %vm2072_vm8, %v1378_v8 }
 0x163   : > { %v432_v14 = vpop.permute.xlu1 %431  ;;  %1383 = vmatpush1.bf16.msk.msra.mxu1 %vm2085_vm10, %v1381_v12  ;;  %1461 = vmatpush1.bf16.msk.msra.mxu0 %vm2085_vm10, %v1381_v12 }
 0x164   : > { %v435_v15 = vsel %vm2409_vm7, %v430_v5, %v432_v14 }
 0x165   : > { %1298 = vmatprep.subr.msk.mxu1 %vm2089_vm11, %v435_v15 }
 0x167   : > { %1299 = vmatpush1.msk.msra.mxu1 %vm2093_vm12, %v434_v17 }
 0x168   : > { %1276 = vmatmul.mubr.msk.f32.vlgmr.msra.gmra.mrb[0].mxu1 %vm467_vm9, %v442_v16  ;;  %1386 = vmatprep.subr.msk.bf16.mxu1 %vm2072_vm8, %v2077_v35  ;;  %vm769_vm9 = vcmask 130048   ;;  %v1277_v35 = vld [vmem:[%s2400_s2 + $0x8] sm:$0xff] }
 0x169   : > { %1389 = vmatpush1.bf16.msk.msra.mxu1 %vm2085_vm10, %v2080_v36  ;;  %1278 = vmatprep.mubr.msk.f32.mxu1 %vm769_vm9, %v725_v34  ;;  %vm2441_vm9 = vcmask 916480  }
 0x16a   : > { %1392 = vmatprep.subr.msk.bf16.mxu1 %vm2114_vm14, %v1366_v49 }
 0x16d   : > { %1395 = vmatpush1.bf16.msk.msra.mxu1 %vm2125_vm0, %v1369_v50 }
 0x16e   : > { %1398 = vmatprep.subr.msk.bf16.mxu1 %vm2142_vm3, %v1372_v63 }
 0x171   : > { %1401 = vmatpush1.bf16.msk.msra.mxu1 %vm2151_vm15, %v1375_v0 }
 0x172   : > { %1404 = vmatprep.subr.msk.bf16.mxu1 %vm2072_vm8, %v1378_v8 }
 0x174   : > { %v465_v18 = vpop.permute.xlu1 %464 }
 0x175   : > { %1407 = vmatpush1.bf16.msk.msra.mxu1 %vm2085_vm10, %v1381_v12 }
 0x23b   : > { %v537_v19 = vpop.f32.mrb[0].mxu1 }
 0x23c   : > { %v538_v20 = vadd.f32 %v537_v19, %v465_v18  ;;  %v539_v21 = vpop.f32.mrb[1].mxu1 }
 0x23d   : > { %v540_v22 = vadd.f32 %v539_v21, %v465_v18 }
 0x23e   : > { %v542_v23 = vmax.f32 %v538_v20, 0.0 }
 0x23f   : > { %v543_v24 = vmax.f32 %v540_v22, 0.0 }
 0x240   : > { %544 = vst [vmem:[%s2020_s18 + $0x10] sm:$0xff] %v542_v23  ;;  %548 = vrot.lane.b32.xlu0 %v542_v23, %s1836_s4 }
 0x241   : > { %545 = vst [vmem:[%s2020_s18 + $0x18] sm:$0xff] %v543_v24  ;;  %550 = vrot.lane.b32.xlu1 %v543_v24, %s1836_s4 }
 0x2b2   : > { %v549_v25 = vpop.permute.xlu0 %548 }
 0x2b3   : > { %556 = vst.msk [vmem:[#allocation3] sm:$0xff] %vm266_vm1, %v549_v25  ;;  %v551_v26 = vpop.permute.xlu1 %550 }
 0x2b4   : > { %v552_v27 = vsel %vm261_vm2, %v549_v25, %v551_v26  ;;  %558 = vst.msk [vmem:[#allocation3 + $0x10] sm:$0xff] %vm261_vm2, %v551_v26 }
 0x2b5   : > { %v1408_v28 = vpack.c.bf16 %v552_v27, %v435_v15 }
 0x2b7   : > { %1410 = vmatprep.subr.msk.bf16.mxu1 %vm2114_vm14, %v1408_v28  ;;  %1464 = vmatprep.subr.msk.bf16.mxu0 %vm2114_vm14, %v1408_v28 }
 0x2ba   : > { %v585_v29 = vld [vmem:[#allocation3] sm:$0xff] }
 0x2bb   : > { %591 = vrot.lane.b32.xlu1 %v585_v29, %s1837_s25  ;;  %571 = vrot.lane.b32.xlu0 %v585_v29, %s1838_s26  ;;  %v1411_v30 = vpack.c.bf16 %v585_v29, %v434_v17  ;;  %v587_v32 = vld [vmem:[#allocation3 + $0x10] sm:$0xff] }
 0x2bc   : > { %v1630_v33 = vpack.i.bf16 %v587_v32, %v552_v27 }
 0x2bd   : > { %1413 = vmatpush1.bf16.msk.msra.mxu1 %vm2125_vm0, %v1411_v30  ;;  %1467 = vmatpush1.bf16.msk.msra.mxu0 %vm2125_vm0, %v1411_v30 }
 0x2bf   : > { %631 = vrot.lane.b32.xlu1 %v585_v29, %s1839_s5  ;;  %611 = vrot.lane.b32.xlu0 %v585_v29, %s1840_s8 }
 0x2c3   : > { %669 = vrot.lane.b32.xlu1 %v585_v29, %s1841_s9  ;;  %649 = vrot.lane.b32.xlu0 %v585_v29, %s1842_s10 }
 0x2c7   : > { %1631 = vrot.lane.b32.xlu1 %v1630_v33, %s1837_s25  ;;  %1626 = vrot.lane.b32.xlu0 %v1630_v33, %s1838_s26 }
 0x2cb   : > { %1641 = vrot.lane.b32.xlu1 %v1630_v33, %s1839_s5  ;;  %1636 = vrot.lane.b32.xlu0 %v1630_v33, %s1840_s8 }
 0x2cf   : > { %1651 = vrot.lane.b32.xlu1 %v1630_v33, %s1841_s9  ;;  %1646 = vrot.lane.b32.xlu0 %v1630_v33, %s1842_s10 }
 0x2d3   : > { %1661 = vrot.lane.b32.xlu1 %v1630_v33, %s1843_s11  ;;  %1656 = vrot.lane.b32.xlu0 %v1630_v33, %s1844_s27 }
 0x2d7   : > { %709 = vrot.lane.b32.xlu1 %v585_v29, %s1843_s11  ;;  %689 = vrot.lane.b32.xlu0 %v585_v29, %s1844_s27 }
 0x2db   : > { %766 = vperm.xlu0 %1665, %v1277_v35  }
 0x32d   : > { %v592_v36 = vpop.permute.xlu1 %591  ;;  %v572_v39 = vpop.permute.xlu0 %571 }
 0x331   : > { %v632_v40 = vpop.permute.xlu1 %631  ;;  %v612_v42 = vpop.permute.xlu0 %611 }
 0x335   : > { %v670_v43 = vpop.permute.xlu1 %669  ;;  %v650_v44 = vpop.permute.xlu0 %649 }
 0x339   : > { %v1632_v45 = vpop.permute.xlu1 %1631  ;;  %v1627_v46 = vpop.permute.xlu0 %1626 }
 0x33a   : > { %v1634_v47 = vunpack.i.h.bf16 %v1632_v45  ;;  %v1633_v49 = vunpack.i.l.bf16 %v1632_v45  ;;  %v1629_v50 = vunpack.i.h.bf16 %v1627_v46  ;;  %v1628_v51 = vunpack.i.l.bf16 %v1627_v46 }
 0x33c   : > { %v597_v52 = vsel %vm2408_vm6, %v592_v36, %v1633_v49  ;;  %v598_v54 = vsel %vm2408_vm6, %v1633_v49, %v1634_v47  ;;  %v577_v55 = vsel %vm288_vm4, %v572_v39, %v1628_v51  ;;  %v578_v56 = vsel %vm288_vm4, %v1628_v51, %v1629_v50  ;;  %vm2442_vm6 = vmmov %vm2441_vm9  ;;  %v724_v36 = vld [vmem:[#allocation7 + $0x10] sm:$0xff] }
 0x33d   : > { %v1414_v57 = vpack.c.bf16 %v598_v54, %v578_v56  ;;  %v1417_v58 = vpack.c.bf16 %v597_v52, %v577_v55  ;;  %v1642_v59 = vpop.permute.xlu1 %1641  ;;  %v1637_v60 = vpop.permute.xlu0 %1636  ;;  %v1027_v55 = vld [vmem:[#allocation7 + $0x28] sm:$0xff]  ;;  %v1279_v56 = vld [vmem:[%s2400_s2 + $0x10] sm:$0xff] }
 0x33e   : > { %v1644_v61 = vunpack.i.h.bf16 %v1642_v59  ;;  %v1643_v63 = vunpack.i.l.bf16 %v1642_v59  ;;  %v1639_v0 = vunpack.i.h.bf16 %v1637_v60  ;;  %v1638_v1 = vunpack.i.l.bf16 %v1637_v60 }
 0x33f   : > { %1416 = vmatprep.subr.msk.bf16.mxu1 %vm2142_vm3, %v1414_v57  ;;  %1470 = vmatprep.subr.msk.bf16.mxu0 %vm2142_vm3, %v1414_v57 }
 0x340   : > { %v637_v3 = vsel %vm351_vm13, %v632_v40, %v1643_v63  ;;  %v638_v4 = vsel %vm351_vm13, %v1643_v63, %v1644_v61  ;;  %v617_v5 = vsel %vm2441_vm9, %v612_v42, %v1638_v1  ;;  %v618_v6 = vsel %vm2442_vm6, %v1638_v1, %v1639_v0  ;;  %1419 = vmatpush1.bf16.msk.msra.mxu1 %vm2151_vm15, %v1417_v58 }
 0x341   : > { %v1420_v7 = vpack.c.bf16 %v638_v4, %v618_v6  ;;  %v1423_v8 = vpack.c.bf16 %v637_v3, %v617_v5  ;;  %1473 = vmatpush1.bf16.msk.msra.mxu0 %vm2151_vm15, %v1417_v58  ;;  %v1652_v9 = vpop.permute.xlu1 %1651  ;;  %v1647_v10 = vpop.permute.xlu0 %1646  ;;  %vm2443_vm6 = vcmask 900096  }
 0x342   : > { %v1654_v11 = vunpack.i.h.bf16 %v1652_v9  ;;  %v1653_v12 = vunpack.i.l.bf16 %v1652_v9  ;;  %v1649_v13 = vunpack.i.h.bf16 %v1647_v10  ;;  %v1648_v14 = vunpack.i.l.bf16 %v1647_v10  ;;  %vm2444_vm9 = vmmov %vm2443_vm6 }
 0x343   : > { %1422 = vmatprep.subr.msk.bf16.mxu1 %vm2072_vm8, %v1420_v7  ;;  %1476 = vmatprep.subr.msk.bf16.mxu0 %vm2072_vm8, %v1420_v7 }
 0x344   : > { %v675_v15 = vsel %vm391_vm5, %v670_v43, %v1653_v12  ;;  %v676_v16 = vsel %vm391_vm5, %v1653_v12, %v1654_v11  ;;  %v655_v17 = vsel %vm2443_vm6, %v650_v44, %v1648_v14  ;;  %v656_v18 = vsel %vm2444_vm9, %v1648_v14, %v1649_v13  ;;  %1425 = vmatpush1.bf16.msk.msra.mxu1 %vm2085_vm10, %v1423_v8 }
 0x345   : > { %v1426_v19 = vpack.c.bf16 %v676_v16, %v656_v18  ;;  %v1429_v20 = vpack.c.bf16 %v675_v15, %v655_v17  ;;  %1479 = vmatpush1.bf16.msk.msra.mxu0 %vm2085_vm10, %v1423_v8  ;;  %v1662_v21 = vpop.permute.xlu1 %1661  ;;  %v1657_v22 = vpop.permute.xlu0 %1656  ;;  %vm2445_vm6 = vcmask 777216  }
 0x346   : > { %v1664_v23 = vunpack.i.h.bf16 %v1662_v21  ;;  %v1663_v24 = vunpack.i.l.bf16 %v1662_v21  ;;  %v1659_v25 = vunpack.i.h.bf16 %v1657_v22  ;;  %v1658_v26 = vunpack.i.l.bf16 %v1657_v22  ;;  %vm2446_vm9 = vmmov %vm2445_vm6 }
 0x347   : > { %1428 = vmatprep.subr.msk.bf16.mxu1 %vm2114_vm14, %v1426_v19  ;;  %1482 = vmatprep.subr.msk.bf16.mxu0 %vm2114_vm14, %v1426_v19 }
 0x348   : > { %v716_v27 = vsel %vm2409_vm7, %v1663_v24, %v1664_v23  ;;  %v696_v28 = vsel %vm2445_vm6, %v1658_v26, %v1659_v25  ;;  %1431 = vmatpush1.bf16.msk.msra.mxu1 %vm2125_vm0, %v1429_v20 }
 0x349   : > { %v1432_v29 = vpack.c.bf16 %v716_v27, %v696_v28  ;;  %1485 = vmatpush1.bf16.msk.msra.mxu0 %vm2125_vm0, %v1429_v20  ;;  %v710_v30 = vpop.permute.xlu1 %709  ;;  %v690_v32 = vpop.permute.xlu0 %689 }
 0x34a   : > { %v715_v33 = vsel %vm2409_vm7, %v710_v30, %v1663_v24  ;;  %v695_v34 = vsel %vm2446_vm9, %v690_v32, %v1658_v26  ;;  %vm2449_vm9 = vcmask 1031168  }
 0x34b   : > { %v1435_v35 = vpack.c.bf16 %v715_v33, %v695_v34  ;;  %1434 = vmatprep.subr.msk.bf16.mxu1 %vm2142_vm3, %v1432_v29  ;;  %1488 = vmatprep.subr.msk.bf16.mxu0 %vm2142_vm3, %v1432_v29 }
 0x34d   : > { %1437 = vmatpush1.bf16.msk.msra.mxu1 %vm2151_vm15, %v1435_v35  ;;  %1491 = vmatpush1.bf16.msk.msra.mxu0 %vm2151_vm15, %v1435_v35 }
 0x350   : > { %838 = vmatmul.mubr.f32.vlgmr.msra.gmra.mrb[2].mxu1 %v724_v36 }
 0x35a   : > { %v767_v39 = vpop.permute.xlu0 %766 }
 0x423   : > { %v839_v40 = vpop.f32.mrb[2].mxu1 }
 0x424   : > { %v840_v42 = vadd.f32 %v839_v40, %v767_v39  ;;  %v841_v43 = vpop.f32.mrb[3].mxu1 }
 0x425   : > { %v842_v44 = vadd.f32 %v841_v43, %v767_v39 }
 0x426   : > { %v844_v45 = vmax.f32 %v840_v42, 0.0 }
 0x427   : > { %v845_v46 = vmax.f32 %v842_v44, 0.0 }
 0x428   : > { %846 = vst [vmem:[%s2020_s18 + $0x20] sm:$0xff] %v844_v45  ;;  %850 = vrot.lane.b32.xlu1 %v844_v45, %s1836_s4 }
 0x429   : > { %847 = vst [vmem:[%s2020_s18 + $0x28] sm:$0xff] %v845_v46 }
 0x42c   : > { %852 = vrot.lane.b32.xlu1 %v845_v46, %s1836_s4  ;;  %s1287_s4 = sshll.u32 %s1891_s16, 10  ;;  %s1847_s16 = smov [#allocation9]  }
 0x49a   : > { %v851_v47 = vpop.permute.xlu1 %850 }
 0x49b   : > { %858 = vst.msk [vmem:[#allocation3] sm:$0xff] %vm266_vm1, %v851_v47  ;;  %vm1089_vm1 = vcmask 719872  }
 0x49c   : > { %1280 = vmatprep.mubr.msk.f32.mxu0 %vm1089_vm1, %v1027_v55  ;;  %vm2451_vm1 = vcmask 900096  }
 0x49d   : > { %vm2452_vm7 = vmmov %vm2451_vm1 }
 0x49e   : > { %v853_v49 = vpop.permute.xlu1 %852 }
 0x49f   : > { %v854_v50 = vsel %vm261_vm2, %v851_v47, %v853_v49  ;;  %860 = vst.msk [vmem:[#allocation3 + $0x10] sm:$0xff] %vm261_vm2, %v853_v49  ;;  %vm2447_vm2 = vcmask 916480  }
 0x4a0   : > { %vm2448_vm6 = vmmov %vm2447_vm2 }
 0x4a2   : > { %v887_v51 = vld [vmem:[#allocation3] sm:$0xff] }
 0x4a3   : > { %893 = vrot.lane.b32.xlu0 %v887_v51, %s1837_s25  ;;  %873 = vrot.lane.b32.xlu1 %v887_v51, %s1838_s26 }
 0x4a6   : > { %v909_v52 = vld [vmem:[#allocation3 + $0x10] sm:$0xff] }
 0x4a7   : > { %933 = vrot.lane.b32.xlu0 %v887_v51, %s1839_s5  ;;  %913 = vrot.lane.b32.xlu1 %v887_v51, %s1840_s8  ;;  %v1676_v54 = vpack.i.bf16 %v909_v52, %v854_v50 }
 0x4ab   : > { %971 = vrot.lane.b32.xlu0 %v887_v51, %s1841_s9  ;;  %951 = vrot.lane.b32.xlu1 %v887_v51, %s1842_s10 }
 0x4af   : > { %1677 = vrot.lane.b32.xlu1 %v1676_v54, %s1840_s8  ;;  %1667 = vrot.lane.b32.xlu0 %v1676_v54, %s1838_s26  ;;  %s1169_s8 = scalar_lea.sflag [#allocation6], %s2006_s30 }
 0x4b3   : > { %1687 = vrot.lane.b32.xlu1 %v1676_v54, %s1842_s10  ;;  %1672 = vrot.lane.b32.xlu0 %v1676_v54, %s1837_s25  ;;  %s1763_s10 = sshll.u32 %s1847_s16, 4  ;;  %s1764_s10 = int_to_ptr.vmem [resolvable:$false] %s1763_s10 }
 0x4b4   : > { %p1766_p10 = scmp.lt.s32.totalorder %s2347_s20, %s1764_s10 }
 0x4b7   : > { %1697 = vrot.lane.b32.xlu1 %v1676_v54, %s1844_s27  ;;  %1682 = vrot.lane.b32.xlu0 %v1676_v54, %s1839_s5  ;;  %s2352_s5 = scalar_lea.hbm %s2401_s3, %s1287_s4 }
 0x4bb   : > { %991 = vrot.lane.b32.xlu1 %v887_v51, %s1844_s27  ;;  %1692 = vrot.lane.b32.xlu0 %v1676_v54, %s1841_s9  ;;  %s1759_s9 = scalar_lea.vmem %s2347_s20, 1024 }
 0x4bc   : > { %p1760_p4 = scmp.ne.s32.totalorder %s2347_s20, %s1759_s9 }
 0x4be   : > { %p1761_p6 = pnand %p1760_p4, %p1961_p12 }
 0x4bf   : > { %1015 = vrot.lane.b32.xlu1 %v909_v52, %s1843_s11  ;;  %1013 = vrot.lane.b32.xlu0 %v854_v50, %s1843_s11 }
 0x4c0   : > { %p1762_p8 = pneg %p1761_p6 }
 0x4c3   : > { %1086 = vperm.xlu1 %1624, %v1279_v56   ;;  %1011 = vrot.lane.b32.xlu0 %v887_v51, %s1843_s11  ;;  %s1765_s11 = scalar_lea.vmem %s1764_s10, 2048 }
 0x4c4   : > { %p1767_p13 = scmp.lt.s32.totalorder %s1765_s11, %s1759_s9 }
 0x4c6   : > { %p1768_p3 = por %p1767_p13, %p1766_p10 }
 0x4c8   : > { %p1769_p7 = pnand %p1768_p3, %p1762_p8 }
 0x515   : > { %v894_v57 = vpop.permute.xlu0 %893  ;;  %v874_v58 = vpop.permute.xlu1 %873 }
 0x519   : > { %v934_v59 = vpop.permute.xlu0 %933  ;;  %v914_v60 = vpop.permute.xlu1 %913 }
 0x51d   : > { %v972_v61 = vpop.permute.xlu0 %971  ;;  %v952_v63 = vpop.permute.xlu1 %951 }
 0x521   : > { %v1668_v0 = vpop.permute.xlu0 %1667  ;;  %v1678_v1 = vpop.permute.xlu1 %1677 }
 0x522   : > { %v1670_v3 = vunpack.i.h.bf16 %v1668_v0  ;;  %v1669_v4 = vunpack.i.l.bf16 %v1668_v0  ;;  %v1680_v7 = vunpack.i.h.bf16 %v1678_v1  ;;  %v1679_v8 = vunpack.i.l.bf16 %v1678_v1 }
 0x524   : > { %v879_v5 = vsel %vm288_vm4, %v874_v58, %v1669_v4  ;;  %v880_v6 = vsel %vm288_vm4, %v1669_v4, %v1670_v3  ;;  %v919_v17 = vsel %vm2447_vm2, %v914_v60, %v1679_v8  ;;  %v920_v18 = vsel %vm2448_vm6, %v1679_v8, %v1680_v7  ;;  %vm2450_vm4 = vmmov %vm2449_vm9 }
 0x525   : > { %v1492_v9 = vpack.c.bf16 %v880_v6, %v854_v50  ;;  %v1495_v10 = vpack.c.bf16 %v879_v5, %v887_v51  ;;  %v1673_v11 = vpop.permute.xlu0 %1672  ;;  %v1688_v12 = vpop.permute.xlu1 %1687  ;;  %v1026_v51 = vld [vmem:[#allocation7 + $0x20] sm:$0xff] }
 0x526   : > { %v1675_v13 = vunpack.i.h.bf16 %v1673_v11  ;;  %v1674_v14 = vunpack.i.l.bf16 %v1673_v11  ;;  %v1690_v15 = vunpack.i.h.bf16 %v1688_v12  ;;  %v1689_v16 = vunpack.i.l.bf16 %v1688_v12 }
 0x527   : > { %1494 = vmatprep.subr.msk.bf16.mxu0 %vm2072_vm8, %v1492_v9 }
 0x528   : > { %v899_v19 = vsel %vm2449_vm9, %v894_v57, %v1674_v14  ;;  %v900_v20 = vsel %vm2450_vm4, %v1674_v14, %v1675_v13  ;;  %1497 = vmatpush1.bf16.msk.msra.mxu0 %vm2085_vm10, %v1495_v10  ;;  %v957_v27 = vsel %vm2451_vm1, %v952_v63, %v1689_v16  ;;  %v958_v28 = vsel %vm2452_vm7, %v1689_v16, %v1690_v15 }
 0x529   : > { %v1498_v21 = vpack.c.bf16 %v920_v18, %v900_v20  ;;  %v1501_v22 = vpack.c.bf16 %v919_v17, %v899_v19  ;;  %v1683_v23 = vpop.permute.xlu0 %1682  ;;  %v1698_v24 = vpop.permute.xlu1 %1697  ;;  %vm2453_vm7 = vcmask 777216  }
 0x52a   : > { %v1685_v25 = vunpack.i.h.bf16 %v1683_v23  ;;  %v1684_v26 = vunpack.i.l.bf16 %v1683_v23  ;;  %v1700_v32 = vunpack.i.h.bf16 %v1698_v24  ;;  %v1699_v33 = vunpack.i.l.bf16 %v1698_v24 }
 0x52b   : > { %1500 = vmatprep.subr.msk.bf16.mxu0 %vm2114_vm14, %v1498_v21  ;;  %vm2455_vm14 = vcmask 769024  }
 0x52c   : > { %v939_v29 = vsel %vm351_vm13, %v934_v59, %v1684_v26  ;;  %v940_v30 = vsel %vm351_vm13, %v1684_v26, %v1685_v25  ;;  %1503 = vmatpush1.bf16.msk.msra.mxu0 %vm2125_vm0, %v1501_v22  ;;  %v998_v48 = vsel %vm2453_vm7, %v1699_v33, %v1700_v32  ;;  %vm2454_vm13 = vmmov %vm2453_vm7 }
 0x52d   : > { %v1504_v34 = vpack.c.bf16 %v958_v28, %v940_v30  ;;  %v1507_v35 = vpack.c.bf16 %v957_v27, %v939_v29  ;;  %v1693_v36 = vpop.permute.xlu0 %1692  ;;  %v992_v39 = vpop.permute.xlu1 %991  ;;  %vm2456_vm0 = vmmov %vm2455_vm14 }
 0x52e   : > { %v1695_v40 = vunpack.i.h.bf16 %v1693_v36  ;;  %v1694_v42 = vunpack.i.l.bf16 %v1693_v36  ;;  %v997_v45 = vsel %vm2454_vm13, %v992_v39, %v1699_v33 }
 0x52f   : > { %1506 = vmatprep.subr.msk.bf16.mxu0 %vm2142_vm3, %v1504_v34 }
 0x530   : > { %v978_v43 = vsel %vm391_vm5, %v1694_v42, %v1695_v40  ;;  %v977_v44 = vsel %vm391_vm5, %v972_v61, %v1694_v42  ;;  %1509 = vmatpush1.bf16.msk.msra.mxu0 %vm2151_vm15, %v1507_v35 }
 0x531   : > { %v1510_v53 = vpack.c.bf16 %v998_v48, %v978_v43  ;;  %v1513_v46 = vpack.c.bf16 %v997_v45, %v977_v44  ;;  %v1014_v47 = vpop.permute.xlu0 %1013  ;;  %v1016_v49 = vpop.permute.xlu1 %1015 }
 0x532   : > { %v1018_v62 = vsel %vm2455_vm14, %v1014_v47, %v1016_v49 }
 0x533   : > { %1512 = vmatprep.subr.msk.bf16.mxu0 %vm2072_vm8, %v1510_v53 }
 0x534   : > { %1515 = vmatpush1.bf16.msk.msra.mxu0 %vm2085_vm10, %v1513_v46 }
 0x535   : > { %v1012_v50 = vpop.permute.xlu0 %1011  ;;  %1358 = vmatprep.subr.msk.mxu0 %vm2089_vm11, %v1018_v62 }
 0x536   : > { %v1017_v2 = vsel %vm2456_vm0, %v1012_v50, %v1014_v47 }
 0x538   : > { %1359 = vmatpush1.msk.msra.mxu0 %vm2093_vm12, %v1017_v2 }
 0x539   : > { %1158 = vmatmul.mubr.f32.vlgmr.msra.gmra.mrb[0].mxu0 %v1026_v51 }
 0x542   : > { %v1087_v31 = vpop.permute.xlu1 %1086 }
 0x60c   : > { %v1159_v52 = vpop.f32.mrb[0].mxu0 }
 0x60d   : > { %v1160_v37 = vadd.f32 %v1159_v52, %v1087_v31  ;;  %v1161_v54 = vpop.f32.mrb[1].mxu0 }
 0x60e   : > { %v1162_v38 = vadd.f32 %v1161_v54, %v1087_v31 }
 0x60f   : > { %v1164_v55 = vmax.f32 %v1160_v37, 0.0 }
 0x610   : > { %v1165_v41 = vmax.f32 %v1162_v38, 0.0 }
 0x611   : > { %1166 = vst [vmem:[%s2020_s18 + $0x30] sm:$0xff] %v1164_v55 }
 0x612   : > { %1167 = vst [vmem:[%s2020_s18 + $0x38] sm:$0xff] %v1165_v41 }
 0x613   : > { %1772 = shalt.err (!%p1769_p7)
}
 0x614   : > { %s1773_s18 = scalar_lea.hbm %s2352_s5, 1024  ;;  %s1777_s29 = scalar_lea.hbm %s2401_s3, 2048 }
 0x615   : > { %p1774_p9 = scmp.ne.s32.totalorder %s2352_s5, %s1773_s18  ;;  %p1778_p0 = scmp.lt.u32.totalorder %s2352_s5, %s2401_s3 }
 0x616   : > { %p1779_p1 = scmp.lt.u32.totalorder %s1777_s29, %s1773_s18  ;;  %p1781_p4 = scmp.lt.u32.totalorder %s1773_s18, %s2352_s5 }
 0x617   : > { %p1775_p2 = pnand %p1774_p9, %p1961_p12 }
 0x618   : > { %p1780_p11 = por %p1779_p1, %p1778_p0 }
 0x619   : > { %p1776_p5 = pneg %p1775_p2 }
 0x61a   : > { %p1782_p6 = por %p1781_p4, %p1780_p11 }
 0x61c   : > { %p1783_p8 = pnand %p1782_p6, %p1776_p5 }
 0x61e   : > { %1786 = shalt.err (!%p1783_p8)
}
 0x61f   : > { %s1848_s6 = smov 256   ;;  %s1849_s7 = smov 16  }
 0x620   : > { %1522 = dma.vmem_to_hbm [thread:$0]  (%p1961_p12), %s2347_s20, 1024, %s2352_s5, %s1169_s8, %s1848_s6, %s1848_s6, %s1849_s7  }
 0x621 PF: > { %s1197_s4 = sand.u32 1, %s1817_s12   ;;  %p2457_p10 = scmp.ne.s32.totalorder %s2411_s19, 0 }
 0x622   : > { %p2458_p13 = scmp.ge.s32.totalorder %s1829_s15, 2  ;;  %s1198_s25 = scalar_lea.sflag [#allocation6], %s1197_s4 }
 0x624   : > { %p1533_p3 = pnand %p2458_p13, %p2457_p10 }
 0x626   : > { %1812 = dma.done.wait (!%p1533_p3), %s1198_s25, 1024  }
 0x627   : > { %1814 = vsyncadd (!%p1533_p3), %s1198_s25, 4294966272  ;;  %p17_p7 = scmp.ge.s32.totalorder %s1926_s24, 4   ;;  %s2459_s12 = smov %s1821_s13 }
 0x628   : > { %s2460_s13 = smov %s1825_s14  ;;  %s2461_s14 = smov %s1957_s17 }
 0x629   : > { %s2462_s15 = smov %s1926_s24  ;;  %19 = sbr.rel (!%p17_p7) target bundleno = 6 (0x6), region = 85 }
 0x630   :  { %1203 = vsyncpa [#allocation5], 1 }
 0x631   :  { %1205 = vsyncpa [#allocation5 + $0x1], 1 }
 0x632   :  { %1206 = vsyncpa [#allocation8], 1 }
 0x633   :  { %1207 = vsyncpa [#allocation6], 1 }
 0x634   :  { %1209 = vsyncpa [#allocation6 + $0x1], 1 }

</bundles_post_ra>
